<compile_context>
chip_gen: v7x
topology: tpu7x:2x2x1
jax: 0.10.0
libtpu: 0.0.40
codegen_flags: <defaults>
</compile_context>

<pallas_src>
import functools

import jax
import jax.numpy as jnp
import numpy as np
from jax.experimental import pallas as pl
from jax.experimental.pallas import tpu as pltpu

_LANES = 128
_BN_EPS = 1e-5


def _round_up(x, m):
    return (x + m - 1) // m * m


# ----------------------------------------------------------------------------
# Fused BasicBlock kernel (one grid step == one image)
# ----------------------------------------------------------------------------
def _fused_basic_block_kernel(x_ref, w1_ref, b1_ref, w2_ref, b2_ref,
                              o_ref, h_ref, *, stride, has_sc, Ho, Wo):
    cin_p = x_ref.shape[-1]
    cout_p = o_ref.shape[-1]

    x = x_ref[...][0]  # stride 1: (Hp, Wp, Cin_p); stride 2: (4*Hq, Wq, Cin_p)

    # ---- conv1 (3x3, stride) + BN1 + ReLU : im2col -> single MXU matmul ----
    cols = []
    if stride == 1:
        for kh in range(3):
            for kw in range(3):
                cols.append(x[kh:kh + Ho, kw:kw + Wo, :].reshape(Ho * Wo, cin_p))
        sc_src = x[1:Ho + 1, 1:Wo + 1, :]          # un-padded interior of x
    else:  # stride == 2: input is space-to-batch phase-stacked, contiguous slices only
        hq = x.shape[0] // 4

        def phase(i):                              # phase (p,q): xp[p::2, q::2]
            return x[i * hq:(i + 1) * hq]

        for kh in range(3):
            p, dh = kh % 2, kh // 2
            for kw in range(3):
                q, dw = kw % 2, kw // 2
                ph = phase(p * 2 + q)
                cols.append(ph[dh:dh + Ho, dw:dw + Wo, :].reshape(Ho * Wo, cin_p))
        sc_src = phase(3)[:Ho, :Wo, :]             # xp[1::2, 1::2] == x[::2, ::2]

    patch1 = jnp.concatenate(cols, axis=-1)        # (Ho*Wo, 9*Cin_p), bf16
    acc1 = jnp.dot(patch1, w1_ref[...], preferred_element_type=jnp.float32)
    h = jnp.maximum(acc1 + b1_ref[...], 0.0)       # BN scale pre-folded into w1

    # ---- stage h (with 1-px zero halo) in VMEM scratch for conv2 ----
    h_ref[...] = jnp.zeros_like(h_ref)
    h_ref[1:Ho + 1, 1:Wo + 1, :] = h.reshape(Ho, Wo, cout_p).astype(h_ref.dtype)

    # ---- conv2 (3x3, stride 1) + BN2 [+ fused projection shortcut] ----
    hp = h_ref[...]                                # (Ho+2, Wo+2, Cout_p) bf16
    cols2 = []
    for kh in range(3):
        for kw in range(3):
            cols2.append(hp[kh:kh + Ho, kw:kw + Wo, :].reshape(Ho * Wo, cout_p))
    if has_sc:
        # 1x1-conv shortcut folded into the same MXU matmul (extra K columns).
        cols2.append(sc_src.reshape(Ho * Wo, cin_p))
    patch2 = jnp.concatenate(cols2, axis=-1)       # (Ho*Wo, K2), bf16
    y = jnp.dot(patch2, w2_ref[...], preferred_element_type=jnp.float32) + b2_ref[...]

    if not has_sc:                                 # identity shortcut
        y = y + sc_src.reshape(Ho * Wo, cout_p).astype(jnp.float32)

    o_ref[...] = jnp.maximum(y, 0.0).reshape(1, Ho * Wo, cout_p).astype(o_ref.dtype)


# ----------------------------------------------------------------------------
# Wrapper: layout plumbing (NCHW <-> lane-dense slabs) + pallas_call
# ----------------------------------------------------------------------------
def basic_block_forward(params, x_nchw):
    """x_nchw: (N, Cin, H, W) -> (N, Cout, Ho, Wo), matching PyTorch."""
    stride = params["stride"]
    assert stride in (1, 2), "only stride 1/2 (ResNet-18/34) supported"
    N, Cin, H, W = x_nchw.shape
    Cout = params["w1"].shape[-1]
    has_sc = params["w_sc"] is not None

    Cin_p = _round_up(Cin, _LANES)
    Cout_p = _round_up(Cout, _LANES)
    Ho = (H + 2 - 3) // stride + 1
    Wo = (W + 2 - 3) // stride + 1

    # Input: NCHW -> NHWC, 1-px spatial halo + channel pad to 128 lanes, bf16.
    x = jnp.transpose(x_nchw, (0, 2, 3, 1))
    xp = jnp.pad(x, ((0, 0), (1, 1), (1, 1), (0, Cin_p - Cin))).astype(jnp.bfloat16)
    if stride == 2:
        assert H % 2 == 0 and W % 2 == 0
        Hq, Wq = (H + 2) // 2, (W + 2) // 2
        # space-to-batch: stack the 4 even/odd phases along H so the kernel
        # only needs contiguous slices (no strided in-kernel gathers).
        xk = jnp.concatenate(
            [xp[:, p::2, q::2, :] for p in (0, 1) for q in (0, 1)], axis=1)
        x_spec = pl.BlockSpec((1, 4 * Hq, Wq, Cin_p), lambda n: (n, 0, 0, 0))
    else:
        xk = xp
        x_spec = pl.BlockSpec((1, H + 2, W + 2, Cin_p), lambda n: (n, 0, 0, 0))

    # Weights: fold BN scale in (per output channel), pad channels to 128,
    # reshape 3x3 convs to (9*Cin_p, Cout_p), cast bf16.
    def prep_w3(w, scale, cin, cin_p):
        w = w * scale                                   # fold BN scale (f32)
        w = jnp.pad(w, ((0, 0), (0, 0), (0, cin_p - cin), (0, Cout_p - Cout)))
        return w.reshape(9 * cin_p, Cout_p).astype(jnp.bfloat16)

    def prep_b(b):
        return jnp.pad(b, (0, Cout_p - Cout)).reshape(1, Cout_p).astype(jnp.float32)

    w1 = prep_w3(params["w1"], params["s1"], Cin, Cin_p)
    b1 = prep_b(params["b1"])
    w2 = prep_w3(params["w2"], params["s2"], Cout, Cout_p)
    if has_sc:
        wsc = jnp.pad(params["w_sc"] * params["s_sc"],
                      ((0, Cin_p - Cin), (0, Cout_p - Cout))).astype(jnp.bfloat16)
        w2 = jnp.concatenate([w2, wsc], axis=0)         # (9*Cout_p + Cin_p, Cout_p)
        b2 = prep_b(params["b2"] + params["b_sc"])      # biases fold too
    else:
        b2 = prep_b(params["b2"])
    K2 = w2.shape[0]

    in_specs = [
        x_spec,
        pl.BlockSpec((9 * Cin_p, Cout_p), lambda n: (0, 0)),
        pl.BlockSpec((1, Cout_p), lambda n: (0, 0)),
        pl.BlockSpec((K2, Cout_p), lambda n: (0, 0)),
        pl.BlockSpec((1, Cout_p), lambda n: (0, 0)),
    ]
    args = [xk, w1, b1, w2, b2]

    kern = functools.partial(_fused_basic_block_kernel, stride=stride,
                             has_sc=has_sc, Ho=Ho, Wo=Wo)

    out_slab = pl.pallas_call(
        kern,
        out_shape=jax.ShapeDtypeStruct((N, Ho * Wo, Cout_p), jnp.float32),
        grid=(N,),
        in_specs=in_specs,
        out_specs=pl.BlockSpec((1, Ho * Wo, Cout_p), lambda n: (n, 0, 0)),
        scratch_shapes=[pltpu.VMEM((Ho + 2, Wo + 2, Cout_p), jnp.bfloat16)],
        compiler_params=pltpu.CompilerParams(
            dimension_semantics=("parallel",),
            vmem_limit_bytes=32 * 1024 * 1024),
    )(*args)

    out = out_slab[:, :, :Cout].reshape(N, Ho, Wo, Cout)
    return jnp.transpose(out, (0, 3, 1, 2))          # NHWC -> NCHW


# ----------------------------------------------------------------------------
# BasicBlock parameters (folded eval-mode BN)
# ----------------------------------------------------------------------------
def _fold_bn(gamma, beta, mean, var, eps=_BN_EPS):
    scale = gamma / jnp.sqrt(var + eps)
    bias = beta - mean * scale
    return scale, bias


def init_basic_block(key, in_channels, out_channels, stride=1):
    ks = jax.random.split(key, 12)
    f32 = jnp.float32

    def bn_params(k0, k1, k2, k3, c):
        gamma = 1.0 + 0.1 * jax.random.normal(k0, (c,), f32)
        beta = 0.1 * jax.random.normal(k1, (c,), f32)
        mean = 0.05 * jax.random.normal(k2, (c,), f32)
        var = jax.random.uniform(k3, (c,), f32, 0.5, 1.5)
        return _fold_bn(gamma, beta, mean, var)

    p = {
        "stride": stride,
        "w1": 0.1 * jax.random.normal(ks[0], (3, 3, in_channels, out_channels), f32),
        "w2": 0.1 * jax.random.normal(ks[1], (3, 3, out_channels, out_channels), f32),
    }
    p["s1"], p["b1"] = bn_params(ks[2], ks[3], ks[4], ks[5], out_channels)
    p["s2"], p["b2"] = bn_params(ks[6], ks[7], ks[8], ks[9], out_channels)

    if stride != 1 or in_channels != out_channels:
        p["w_sc"] = 0.1 * jax.random.normal(ks[10], (in_channels, out_channels), f32)
        ks2 = jax.random.split(ks[11], 4)
        p["s_sc"], p["b_sc"] = bn_params(ks2[0], ks2[1], ks2[2], ks2[3], out_channels)
    else:
        p["w_sc"] = None
    return p


# ----------------------------------------------------------------------------
# Pure-JAX f32 reference (correctness check only)
# ----------------------------------------------------------------------------
def _ref_conv(x, w, stride, pad):
    return jax.lax.conv_general_dilated(
        x, w, (stride, stride), [(pad, pad), (pad, pad)],
        dimension_numbers=("NHWC", "HWIO", "NHWC"))


def basic_block_ref(params, x_nchw):
    x = jnp.transpose(x_nchw, (0, 2, 3, 1))
    stride = params["stride"]
    if params["w_sc"] is not None:
        sc = _ref_conv(x, params["w_sc"][None, None], stride, 0)
        sc = sc * params["s_sc"] + params["b_sc"]
    else:
        sc = x
    h = _ref_conv(x, params["w1"], stride, 1) * params["s1"] + params["b1"]
    h = jnp.maximum(h, 0.0)
    y = _ref_conv(h, params["w2"], 1, 1) * params["s2"] + params["b2"]
    y = jnp.maximum(y + sc, 0.0)
    return jnp.transpose(y, (0, 3, 1, 2))


# ----------------------------------------------------------------------------
if __name__ == "__main__":
    key = jax.random.PRNGKey(0)
    k_x1, k_p1, k_x2, k_p2 = jax.random.split(key, 4)

    # 1) Down-sampling block: stride 2, channel change -> 1x1-conv shortcut.
    N, Cin, H, W = 2, 4, 16, 16
    Cout, stride = 8, 2
    x1 = jax.random.normal(k_x1, (N, Cin, H, W), jnp.float32)
    p1 = init_basic_block(k_p1, Cin, Cout, stride=stride)
    out1 = jax.block_until_ready(basic_block_forward(p1, x1))
    ref1 = jax.block_until_ready(basic_block_ref(p1, x1))
    assert out1.shape == (N, Cout, H // stride, W // stride), out1.shape
    # bf16 operands (f32 accumulation) -> relaxed tolerance vs f32 reference.
    np.testing.assert_allclose(np.asarray(out1), np.asarray(ref1),
                               rtol=2e-2, atol=3e-2)

    # 2) Identity-shortcut block: stride 1, same channels.
    x2 = jax.random.normal(k_x2, (N, Cout, 8, 8), jnp.float32)
    p2 = init_basic_block(k_p2, Cout, Cout, stride=1)
    out2 = jax.block_until_ready(basic_block_forward(p2, x2))
    ref2 = jax.block_until_ready(basic_block_ref(p2, x2))
    assert out2.shape == (N, Cout, 8, 8), out2.shape
    np.testing.assert_allclose(np.asarray(out2), np.asarray(ref2),
                               rtol=2e-2, atol=3e-2)

    print("KERNEL_OK")
</pallas_src>

<mosaic_0001>
module attributes {stable_mosaic.version = 11 : i64} {
  func.func @_fused_basic_block_kernel(%arg0: i32, %arg1: memref<1x36x9x128xbf16, #tpu.memory_space<vmem>>, %arg2: memref<1152x128xbf16, #tpu.memory_space<vmem>>, %arg3: memref<1x128xf32, #tpu.memory_space<vmem>>, %arg4: memref<1280x128xbf16, #tpu.memory_space<vmem>>, %arg5: memref<1x128xf32, #tpu.memory_space<vmem>>, %arg6: memref<1x64x128xf32, #tpu.memory_space<vmem>>, %arg7: memref<10x10x128xbf16, #tpu.memory_space<vmem>>) attributes {dimension_semantics = [#tpu.dimension_semantics<parallel>], iteration_bounds = array<i64: 2>, scalar_prefetch = 0 : i64, scratch_operands = 1 : i64, tpu.core_type = #tpu.core_type<tc>, window_params = [{transform_indices = @transform_0, window_bounds = array<i64: 1, 36, 9, 128>}, {pipeline_mode = #tpu.pipeline_mode<synchronous>, transform_indices = @transform_1, window_bounds = array<i64: 1152, 128>}, {pipeline_mode = #tpu.pipeline_mode<synchronous>, transform_indices = @transform_2, window_bounds = array<i64: 1, 128>}, {pipeline_mode = #tpu.pipeline_mode<synchronous>, transform_indices = @transform_3, window_bounds = array<i64: 1280, 128>}, {pipeline_mode = #tpu.pipeline_mode<synchronous>, transform_indices = @transform_4, window_bounds = array<i64: 1, 128>}, {transform_indices = @transform_5, window_bounds = array<i64: 1, 64, 128>}]} {
    %c0 = arith.constant 0 : index
    %c0_0 = arith.constant 0 : index
    %c0_1 = arith.constant 0 : index
    %c0_2 = arith.constant 0 : index
    %0 = vector.load %arg1[%c0, %c0_0, %c0_1, %c0_2] : memref<1x36x9x128xbf16, #tpu.memory_space<vmem>>, vector<1x36x9x128xbf16>
    %1 = vector.shape_cast %0 : vector<1x36x9x128xbf16> to vector<36x9x128xbf16>
    %2 = vector.extract_strided_slice %1 {offsets = [0, 0, 0], sizes = [9, 9, 128], strides = [1, 1, 1]} : vector<36x9x128xbf16> to vector<9x9x128xbf16>
    %3 = vector.extract_strided_slice %2 {offsets = [0, 0, 0], sizes = [8, 8, 128], strides = [1, 1, 1]} : vector<9x9x128xbf16> to vector<8x8x128xbf16>
    %4 = vector.shape_cast %3 : vector<8x8x128xbf16> to vector<64x128xbf16>
    %5 = vector.extract_strided_slice %1 {offsets = [9, 0, 0], sizes = [9, 9, 128], strides = [1, 1, 1]} : vector<36x9x128xbf16> to vector<9x9x128xbf16>
    %6 = vector.extract_strided_slice %5 {offsets = [0, 0, 0], sizes = [8, 8, 128], strides = [1, 1, 1]} : vector<9x9x128xbf16> to vector<8x8x128xbf16>
    %7 = vector.shape_cast %6 : vector<8x8x128xbf16> to vector<64x128xbf16>
    %8 = vector.extract_strided_slice %1 {offsets = [0, 0, 0], sizes = [9, 9, 128], strides = [1, 1, 1]} : vector<36x9x128xbf16> to vector<9x9x128xbf16>
    %9 = vector.extract_strided_slice %8 {offsets = [0, 1, 0], sizes = [8, 8, 128], strides = [1, 1, 1]} : vector<9x9x128xbf16> to vector<8x8x128xbf16>
    %10 = vector.shape_cast %9 : vector<8x8x128xbf16> to vector<64x128xbf16>
    %11 = vector.extract_strided_slice %1 {offsets = [18, 0, 0], sizes = [9, 9, 128], strides = [1, 1, 1]} : vector<36x9x128xbf16> to vector<9x9x128xbf16>
    %12 = vector.extract_strided_slice %11 {offsets = [0, 0, 0], sizes = [8, 8, 128], strides = [1, 1, 1]} : vector<9x9x128xbf16> to vector<8x8x128xbf16>
    %13 = vector.shape_cast %12 : vector<8x8x128xbf16> to vector<64x128xbf16>
    %14 = vector.extract_strided_slice %1 {offsets = [27, 0, 0], sizes = [9, 9, 128], strides = [1, 1, 1]} : vector<36x9x128xbf16> to vector<9x9x128xbf16>
    %15 = vector.extract_strided_slice %14 {offsets = [0, 0, 0], sizes = [8, 8, 128], strides = [1, 1, 1]} : vector<9x9x128xbf16> to vector<8x8x128xbf16>
    %16 = vector.shape_cast %15 : vector<8x8x128xbf16> to vector<64x128xbf16>
    %17 = vector.extract_strided_slice %1 {offsets = [18, 0, 0], sizes = [9, 9, 128], strides = [1, 1, 1]} : vector<36x9x128xbf16> to vector<9x9x128xbf16>
    %18 = vector.extract_strided_slice %17 {offsets = [0, 1, 0], sizes = [8, 8, 128], strides = [1, 1, 1]} : vector<9x9x128xbf16> to vector<8x8x128xbf16>
    %19 = vector.shape_cast %18 : vector<8x8x128xbf16> to vector<64x128xbf16>
    %20 = vector.extract_strided_slice %1 {offsets = [0, 0, 0], sizes = [9, 9, 128], strides = [1, 1, 1]} : vector<36x9x128xbf16> to vector<9x9x128xbf16>
    %21 = vector.extract_strided_slice %20 {offsets = [1, 0, 0], sizes = [8, 8, 128], strides = [1, 1, 1]} : vector<9x9x128xbf16> to vector<8x8x128xbf16>
    %22 = vector.shape_cast %21 : vector<8x8x128xbf16> to vector<64x128xbf16>
    %23 = vector.extract_strided_slice %1 {offsets = [9, 0, 0], sizes = [9, 9, 128], strides = [1, 1, 1]} : vector<36x9x128xbf16> to vector<9x9x128xbf16>
    %24 = vector.extract_strided_slice %23 {offsets = [1, 0, 0], sizes = [8, 8, 128], strides = [1, 1, 1]} : vector<9x9x128xbf16> to vector<8x8x128xbf16>
    %25 = vector.shape_cast %24 : vector<8x8x128xbf16> to vector<64x128xbf16>
    %26 = vector.extract_strided_slice %1 {offsets = [0, 0, 0], sizes = [9, 9, 128], strides = [1, 1, 1]} : vector<36x9x128xbf16> to vector<9x9x128xbf16>
    %27 = vector.extract_strided_slice %26 {offsets = [1, 1, 0], sizes = [8, 8, 128], strides = [1, 1, 1]} : vector<9x9x128xbf16> to vector<8x8x128xbf16>
    %28 = vector.shape_cast %27 : vector<8x8x128xbf16> to vector<64x128xbf16>
    %29 = vector.extract_strided_slice %1 {offsets = [27, 0, 0], sizes = [9, 9, 128], strides = [1, 1, 1]} : vector<36x9x128xbf16> to vector<9x9x128xbf16>
    %30 = vector.extract_strided_slice %29 {offsets = [0, 0, 0], sizes = [8, 8, 128], strides = [1, 1, 1]} : vector<9x9x128xbf16> to vector<8x8x128xbf16>
    %31 = tpu.concatenate %4, %7, %10, %13, %16, %19, %22, %25, %28 in 1 : vector<64x128xbf16>, vector<64x128xbf16>, vector<64x128xbf16>, vector<64x128xbf16>, vector<64x128xbf16>, vector<64x128xbf16>, vector<64x128xbf16>, vector<64x128xbf16>, vector<64x128xbf16> -> vector<64x1152xbf16>
    %c0_3 = arith.constant 0 : index
    %c0_4 = arith.constant 0 : index
    %32 = vector.load %arg2[%c0_3, %c0_4] : memref<1152x128xbf16, #tpu.memory_space<vmem>>, vector<1152x128xbf16>
    %cst = arith.constant dense<0.000000e+00> : vector<64x128xf32>
    %33 = tpu.matmul %31, %32, %cst {dimension_numbers = #tpu.dot_dimension_numbers<[1], [0], [0], [1], [0, 0, 1, 1], [], []>} : vector<64x1152xbf16>, vector<1152x128xbf16>, vector<64x128xf32> -> vector<64x128xf32>
    %c0_5 = arith.constant 0 : index
    %c0_6 = arith.constant 0 : index
    %34 = vector.load %arg3[%c0_5, %c0_6] : memref<1x128xf32, #tpu.memory_space<vmem>>, vector<1x128xf32>
    %35 = vector.broadcast %34 : vector<1x128xf32> to vector<64x128xf32>
    %36 = arith.addf %33, %35 : vector<64x128xf32>
    %cst_7 = arith.constant 0.000000e+00 : f32
    %37 = vector.broadcast %cst_7 : f32 to vector<64x128xf32>
    %38 = arith.maximumf %36, %37 : vector<64x128xf32>
    %cst_8 = arith.constant 0.000000e+00 : bf16
    %39 = vector.broadcast %cst_8 : bf16 to vector<10x10x128xbf16>
    %c0_9 = arith.constant 0 : index
    %c0_10 = arith.constant 0 : index
    %c0_11 = arith.constant 0 : index
    %40 = vector.load %arg7[%c0_9, %c0_10, %c0_11] : memref<10x10x128xbf16, #tpu.memory_space<vmem>>, vector<10x10x128xbf16>
    tpu.vector_store %arg7[%c0_9, %c0_10, %c0_11], %39 {strides = array<i32>} : memref<10x10x128xbf16, #tpu.memory_space<vmem>>, vector<10x10x128xbf16>,
    %41 = vector.shape_cast %38 : vector<64x128xf32> to vector<8x8x128xf32>
    %42 = arith.truncf %41 : vector<8x8x128xf32> to vector<8x8x128xbf16>
    %c1 = arith.constant 1 : index
    %c1_12 = arith.constant 1 : index
    %c0_13 = arith.constant 0 : index
    %43 = vector.load %arg7[%c1, %c1_12, %c0_13] : memref<10x10x128xbf16, #tpu.memory_space<vmem>>, vector<8x8x128xbf16>
    tpu.vector_store %arg7[%c1, %c1_12, %c0_13], %42 {strides = array<i32>} : memref<10x10x128xbf16, #tpu.memory_space<vmem>>, vector<8x8x128xbf16>,
    %c0_14 = arith.constant 0 : index
    %c0_15 = arith.constant 0 : index
    %c0_16 = arith.constant 0 : index
    %44 = vector.load %arg7[%c0_14, %c0_15, %c0_16] : memref<10x10x128xbf16, #tpu.memory_space<vmem>>, vector<10x10x128xbf16>
    %45 = vector.extract_strided_slice %44 {offsets = [0, 0, 0], sizes = [8, 8, 128], strides = [1, 1, 1]} : vector<10x10x128xbf16> to vector<8x8x128xbf16>
    %46 = vector.shape_cast %45 : vector<8x8x128xbf16> to vector<64x128xbf16>
    %47 = vector.extract_strided_slice %44 {offsets = [0, 1, 0], sizes = [8, 8, 128], strides = [1, 1, 1]} : vector<10x10x128xbf16> to vector<8x8x128xbf16>
    %48 = vector.shape_cast %47 : vector<8x8x128xbf16> to vector<64x128xbf16>
    %49 = vector.extract_strided_slice %44 {offsets = [0, 2, 0], sizes = [8, 8, 128], strides = [1, 1, 1]} : vector<10x10x128xbf16> to vector<8x8x128xbf16>
    %50 = vector.shape_cast %49 : vector<8x8x128xbf16> to vector<64x128xbf16>
    %51 = vector.extract_strided_slice %44 {offsets = [1, 0, 0], sizes = [8, 8, 128], strides = [1, 1, 1]} : vector<10x10x128xbf16> to vector<8x8x128xbf16>
    %52 = vector.shape_cast %51 : vector<8x8x128xbf16> to vector<64x128xbf16>
    %53 = vector.extract_strided_slice %44 {offsets = [1, 1, 0], sizes = [8, 8, 128], strides = [1, 1, 1]} : vector<10x10x128xbf16> to vector<8x8x128xbf16>
    %54 = vector.shape_cast %53 : vector<8x8x128xbf16> to vector<64x128xbf16>
    %55 = vector.extract_strided_slice %44 {offsets = [1, 2, 0], sizes = [8, 8, 128], strides = [1, 1, 1]} : vector<10x10x128xbf16> to vector<8x8x128xbf16>
    %56 = vector.shape_cast %55 : vector<8x8x128xbf16> to vector<64x128xbf16>
    %57 = vector.extract_strided_slice %44 {offsets = [2, 0, 0], sizes = [8, 8, 128], strides = [1, 1, 1]} : vector<10x10x128xbf16> to vector<8x8x128xbf16>
    %58 = vector.shape_cast %57 : vector<8x8x128xbf16> to vector<64x128xbf16>
    %59 = vector.extract_strided_slice %44 {offsets = [2, 1, 0], sizes = [8, 8, 128], strides = [1, 1, 1]} : vector<10x10x128xbf16> to vector<8x8x128xbf16>
    %60 = vector.shape_cast %59 : vector<8x8x128xbf16> to vector<64x128xbf16>
    %61 = vector.extract_strided_slice %44 {offsets = [2, 2, 0], sizes = [8, 8, 128], strides = [1, 1, 1]} : vector<10x10x128xbf16> to vector<8x8x128xbf16>
    %62 = vector.shape_cast %61 : vector<8x8x128xbf16> to vector<64x128xbf16>
    %63 = vector.shape_cast %30 : vector<8x8x128xbf16> to vector<64x128xbf16>
    %64 = tpu.concatenate %46, %48, %50, %52, %54, %56, %58, %60, %62, %63 in 1 : vector<64x128xbf16>, vector<64x128xbf16>, vector<64x128xbf16>, vector<64x128xbf16>, vector<64x128xbf16>, vector<64x128xbf16>, vector<64x128xbf16>, vector<64x128xbf16>, vector<64x128xbf16>, vector<64x128xbf16> -> vector<64x1280xbf16>
    %c0_17 = arith.constant 0 : index
    %c0_18 = arith.constant 0 : index
    %65 = vector.load %arg4[%c0_17, %c0_18] : memref<1280x128xbf16, #tpu.memory_space<vmem>>, vector<1280x128xbf16>
    %cst_19 = arith.constant dense<0.000000e+00> : vector<64x128xf32>
    %66 = tpu.matmul %64, %65, %cst_19 {dimension_numbers = #tpu.dot_dimension_numbers<[1], [0], [0], [1], [0, 0, 1, 1], [], []>} : vector<64x1280xbf16>, vector<1280x128xbf16>, vector<64x128xf32> -> vector<64x128xf32>
    %c0_20 = arith.constant 0 : index
    %c0_21 = arith.constant 0 : index
    %67 = vector.load %arg5[%c0_20, %c0_21] : memref<1x128xf32, #tpu.memory_space<vmem>>, vector<1x128xf32>
    %68 = vector.broadcast %67 : vector<1x128xf32> to vector<64x128xf32>
    %69 = arith.addf %66, %68 : vector<64x128xf32>
    %cst_22 = arith.constant 0.000000e+00 : f32
    %70 = vector.broadcast %cst_22 : f32 to vector<64x128xf32>
    %71 = arith.maximumf %69, %70 : vector<64x128xf32>
    %72 = vector.shape_cast %71 : vector<64x128xf32> to vector<1x64x128xf32>
    %c0_23 = arith.constant 0 : index
    %c0_24 = arith.constant 0 : index
    %c0_25 = arith.constant 0 : index
    %73 = vector.load %arg6[%c0_23, %c0_24, %c0_25] : memref<1x64x128xf32, #tpu.memory_space<vmem>>, vector<1x64x128xf32>
    tpu.vector_store %arg6[%c0_23, %c0_24, %c0_25], %72 {strides = array<i32>} : memref<1x64x128xf32, #tpu.memory_space<vmem>>, vector<1x64x128xf32>,
    return
  }
  func.func @transform_0(%arg0: i32) -> (i32, i32, i32, i32) {
    %c0_i32 = arith.constant 0 : i32
    %c0_i32_0 = arith.constant 0 : i32
    %c0_i32_1 = arith.constant 0 : i32
    %c0_i32_2 = arith.constant 0 : i32
    return %arg0, %c0_i32, %c0_i32_0, %c0_i32_1 : i32, i32, i32, i32
  }
  func.func @transform_1(%arg0: i32) -> (i32, i32) {
    %c0_i32 = arith.constant 0 : i32
    %c0_i32_0 = arith.constant 0 : i32
    %c0_i32_1 = arith.constant 0 : i32
    return %c0_i32, %c0_i32_0 : i32, i32
  }
  func.func @transform_2(%arg0: i32) -> (i32, i32) {
    %c0_i32 = arith.constant 0 : i32
    %c0_i32_0 = arith.constant 0 : i32
    %c0_i32_1 = arith.constant 0 : i32
    return %c0_i32, %c0_i32_0 : i32, i32
  }
  func.func @transform_3(%arg0: i32) -> (i32, i32) {
    %c0_i32 = arith.constant 0 : i32
    %c0_i32_0 = arith.constant 0 : i32
    %c0_i32_1 = arith.constant 0 : i32
    return %c0_i32, %c0_i32_0 : i32, i32
  }
  func.func @transform_4(%arg0: i32) -> (i32, i32) {
    %c0_i32 = arith.constant 0 : i32
    %c0_i32_0 = arith.constant 0 : i32
    %c0_i32_1 = arith.constant 0 : i32
    return %c0_i32, %c0_i32_0 : i32, i32
  }
  func.func @transform_5(%arg0: i32) -> (i32, i32, i32) {
    %c0_i32 = arith.constant 0 : i32
    %c0_i32_0 = arith.constant 0 : i32
    %c0_i32_1 = arith.constant 0 : i32
    return %arg0, %c0_i32, %c0_i32_0 : i32, i32, i32
  }
}

</mosaic_0001>

<bundles_post_ra>
// kernel: tpu_custom_call.1
= control target key start
LH: loop header
LB: loop body
LE: loop exit
PB: predicated region body
PF: predicated region fallthrough
CT: control target
= control target key end

     0   :  { %10 = vsyncpa [#allocation4], 0  ;;  %s5133_s0 = inlined_call_operand.vmem [shape: bf16[2,36,9,128], index: 0, kind: input, shape index: {}]   ;;  %s5134_s1 = inlined_call_operand.hbm [shape: bf16[1152,128], index: 1, kind: input, shape index: {}]   ;;  %s5135_s2 = inlined_call_operand.vmem [shape: f32[1,128], index: 2, kind: input, shape index: {}]   ;;  %s5136_s3 = inlined_call_operand.vmem [shape: bf16[1280,128], index: 3, kind: input, shape index: {}]   ;;  %s5137_s4 = inlined_call_operand.vmem [shape: f32[1,128], index: 4, kind: input, shape index: {}]   ;;  %s5138_s5 = inlined_call_operand.hbm [shape: f32[2,64,128], index: 5, kind: output, shape index: {}]  }
   0x1   :  { %11 = vsyncpa [#allocation5], 0 }
   0x2   :  { %13 = vsyncpa [#allocation5 + $0x1], 0  ;;  %s4205_s18 = smov 0   ;;  %s4207_s19 = smov 0  }
   0x3   :  { %s4209_s20 = smov 0   ;;  %s4211_s21 = smov 0  }
   0x4 LB: > { %s4226_s22 = sadd.s32 4294967295, %s4166_s21   ;;  %s3174_s23 = sadd.s32 4294967294, %s4166_s21   ;;  %s4166_s21 = sphi %s4211_s21, %s5162_s21   ;;  %s4162_s20 = sphi %s4209_s20, %s5161_s20   ;;  %s4158_s19 = sphi %s4207_s19, %s5160_s19   ;;  %s4154_s18 = sphi %s4205_s18, %s5159_s18  }
   0x5   : > { %s4230_s24 = sadd.s32 1, %s4166_s21   ;;  %s136_s25 = sadd.s32 1, %s4162_s20 }
   0x6   : > { %s133_s26 = ssub.s32 %s4166_s21, %s4230_s24  ;;  %p146_p0 = scmp.ne.s32.totalorder %s4162_s20, %s4158_s19 }
   0x7   : > { %p134_p1 = scmp.eq.s32.totalorder %s133_s26, 0  ;;  %p147_p2 = scmp.eq.s32.totalorder %s4226_s22, 1 }
   0x8   : > { %p152_p3 = scmp.ne.s32.totalorder %s4158_s19, %s4154_s18  ;;  %p153_p4 = scmp.eq.s32.totalorder %s3174_s23, 1 }
   0x9   : > { %s4241_s27 = scalar_select %p134_p1, %s4162_s20, %s136_s25  }
   0xa   : > { %p4243_p5 = por %p147_p2, %p146_p0  ;;  %p4247_p6 = por %p153_p4, %p152_p3 }
   0xb   : > { %p3175_p7 = scmp.ge.s32.totalorder %s4166_s21, 1  ;;  %p160_p8 = scmp.lt.s32.totalorder %s4166_s21, 3 }
   0xc   : > { %s5142_s28 = scalar_select %p4243_p5, 1, 0 }
   0xd   : > { %s5143_s29 = scalar_select %p4247_p6, 1, 0 }
   0xe   : > { %p5139_p9 = scmp.eq.s32.totalorder %s4226_s22, 0  ;;  %p4254_p10 = pnand %p3175_p7, %p160_p8 }
   0xf   : > { %s4168_s6 = smov [#allocation3]   ;;  %s4072_s11 = scalar_lea.hbm %s5134_s1, 9216 }
  0x10   : > { %s5144_s30 = scalar_select %p4254_p10, 1, 0 }
  0x11   : > { %s172_s7 = sshll.u32 %s4168_s6, 4  ;;  %p3834_p11 = pneg %p4254_p10  ;;  %s173_s7 = int_to_ptr.vmem [resolvable:$true] %s172_s7 }
  0x12   : > { %p4073_p13 = scmp.ne.s32.totalorder %s5134_s1, %s4072_s11  ;;  %p4079_p3 = scmp.lt.u32.totalorder %s4072_s11, %s5134_s1 }
  0x13   : > { %p4262_p12 = pnand %p5139_p9, %p3834_p11 }
  0x15   : > { %p4074_p0 = pneg %p4262_p12 }
  0x17   : > { %p4075_p1 = pnand %p4074_p0, %p4073_p13 }
  0x19   : > { %p4076_p2 = pneg %p4075_p1 }
  0x1b   : > { %p4081_p4 = pnand %p4079_p3, %p4076_p2 }
  0x1d   : > { %4084 = shalt.err (!%p4081_p4)
}
  0x1e   : > { %s4085_s16 = scalar_lea.vmem %s173_s7, 9216  ;;  %p4093_p9 = scmp.lt.s32.totalorder %s173_s7, %s173_s7 }
  0x1f   : > { %p4086_p7 = scmp.ne.s32.totalorder %s173_s7, %s4085_s16  ;;  %p4094_p6 = scmp.lt.s32.totalorder %s4085_s16, %s4085_s16 }
  0x21   : > { %p4088_p8 = pnand %p4086_p7, %p4074_p0  ;;  %p4095_p5 = por %p4094_p6, %p4093_p9 }
  0x23   : > { %p4089_p11 = pneg %p4088_p8 }
  0x25   : > { %p4096_p10 = pnand %p4095_p5, %p4089_p11 }
  0x27   : > { %4099 = shalt.err (!%p4096_p10)
}
  0x28   : > { %s4169_s17 = smov 64   ;;  %s4170_s23 = smov 4  }
  0x29   : > { %3837 = dma.hbm_to_vmem [thread:$0]  (!%p4262_p12), %s5134_s1, 9216, %s173_s7, [#allocation4], %s4169_s17, %s4169_s17, %s4170_s23  }
  0x2a   : > { %p5146_p13 = scmp.ne.s32.totalorder %s5144_s30, 0 }
  0x2b   : > { %p5147_p1 = scmp.eq.s32.totalorder (!%p5146_p13), %s4226_s22, 0 }
  0x2c   : > { %205 = sbr.rel (%p5146_p13) target bundleno = 723 (0x2d3), region = 40 }
  0x33   : > { %4145 = dma.done.wait (%p5147_p1), [#allocation4], 9216   ;;  %p5148_p0 = pmov %p5147_p1 }
  0x34   : > { %v3883_v0 = vld [vmem:[#allocation3 + $0x40] sm:$0xff]   ;;  %v3887_v4 = vld [vmem:[#allocation3 + $0x48] sm:$0xff]   ;;  %v3891_v8 = vld [vmem:[#allocation3 + $0x50] sm:$0xff]   ;;  %p233_p5 = scmp.lt.s32.totalorder %s4226_s22, 1  ;;  %vm290_vm0 = vsmask.f32 3328 }
  0x35   : > { %4147 = vsyncadd (%p5148_p0), [#allocation4], 4294958080  ;;  %v3884_v1 = vld [vmem:[#allocation3] sm:$0xff]   ;;  %3431 = vmatprep.subr.bf16.mxu0 %v3883_v0  ;;  %v3888_v5 = vld [vmem:[#allocation3 + $0x8] sm:$0xff]   ;;  %vm291_vm1 = vsmask.f32 7440 }
  0x36   : > { %v3885_v2 = vld [vmem:[#allocation3 + $0xc0] sm:$0xff]   ;;  %3432 = vmatpush3.bf16.msra.mxu0 %v3884_v1  ;;  %v3889_v6 = vld [vmem:[#allocation3 + $0xc8] sm:$0xff]   ;;  %v3892_v9 = vld [vmem:[#allocation3 + $0x10] sm:$0xff]   ;;  %s234_s30 = scalar_select %p233_p5, %s4226_s22, 1  ;;  %vm1737_vm3 = vcmask 1043456   ;;  %vm1743_vm5 = vcmask 1040384  }
  0x37   : > { %v3886_v3 = vld [vmem:[#allocation3 + $0x80] sm:$0xff]   ;;  %3471 = vmatprep.subr.bf16.mxu1 %v3885_v2  ;;  %3433 = vmatprep.subr.bf16.mxu0 %v3887_v4  ;;  %v3890_v7 = vld [vmem:[#allocation3 + $0x88] sm:$0xff]   ;;  %v3893_v10 = vld [vmem:[#allocation3 + $0xd0] sm:$0xff]   ;;  %vm1738_vm4 = vsmask.f32 7938  ;;  %vm1939_vm7 = vcmask 1042432  }
  0x38   : > { %3472 = vmatpush3.bf16.msra.mxu1 %v3886_v3  ;;  %v3894_v11 = vld [vmem:[#allocation3 + $0x90] sm:$0xff]   ;;  %v3895_v12 = vld [vmem:[#allocation3 + $0x58] sm:$0xff]   ;;  %v3899_v16 = vld [vmem:[#allocation3 + $0x60] sm:$0xff]   ;;  %s3827_s6 = smul.u32 288, %s234_s30  ;;  %vm1744_vm6 = vsmask.f32 256 }
  0x39   : > { %3473 = vmatprep.subr.bf16.mxu1 %v3889_v6  ;;  %v3896_v13 = vld [vmem:[#allocation3 + $0x18] sm:$0xff]   ;;  %v3900_v17 = vld [vmem:[#allocation3 + $0x20] sm:$0xff]   ;;  %v3903_v20 = vld [vmem:[#allocation3 + $0x68] sm:$0xff]   ;;  %vm1940_vm8 = vcmask 1046532   ;;  %s3430_s12 = sshll.u32 %s4226_s22, 10  ;;  %p5157_p9 = scmp.ne.s32.totalorder %s5142_s28, 0 }
  0x3a   : > { %3434 = vmatpush3.bf16.msra.mxu0 %v3888_v5  ;;  %v3897_v14 = vld [vmem:[#allocation3 + $0xd8] sm:$0xff]   ;;  %v3901_v18 = vld [vmem:[#allocation3 + $0xe0] sm:$0xff]   ;;  %v3904_v21 = vld [vmem:[#allocation3 + $0x28] sm:$0xff]   ;;  %s4293_s9 = scalar_lea.vmem %s5133_s0, %s3827_s6  ;;  %s5087_s15 = scalar_lea.hbm %s5138_s5, %s3430_s12 }
  0x3b   : > { %3435 = vmatprep.subr.bf16.mxu0 %v3891_v8  ;;  %v3898_v15 = vld [vmem:[#allocation3 + $0x98] sm:$0xff]   ;;  %v3902_v19 = vld [vmem:[#allocation3 + $0xa0] sm:$0xff]   ;;  %v3905_v22 = vld [vmem:[#allocation3 + $0xe8] sm:$0xff]   ;;  %s4172_s22 = smov [#allocation6]  }
  0x3c   : > { %3474 = vmatpush3.bf16.msra.mxu1 %v3890_v7  ;;  %v3906_v23 = vld [vmem:[#allocation3 + $0xa8] sm:$0xff]   ;;  %v3907_v24 = vld [vmem:[#allocation3 + $0x70] sm:$0xff]   ;;  %v3911_v28 = vld [vmem:[#allocation3 + $0x78] sm:$0xff]   ;;  %s4104_s23 = sshll.u32 %s4172_s22, 4  ;;  %s4105_s23 = int_to_ptr.vmem [resolvable:$false] %s4104_s23 }
  0x3d   : > { %3475 = vmatprep.subr.bf16.mxu1 %v3893_v10  ;;  %v3908_v25 = vld [vmem:[#allocation3 + $0x30] sm:$0xff]   ;;  %v3912_v29 = vld [vmem:[#allocation3 + $0x38] sm:$0xff]   ;;  %v4297_v32 = vld [vmem:[%s4293_s9 + $0x50] sm:$0xf]  ;;  %s4106_s25 = scalar_lea.vmem %s4105_s23, 2048 }
  0x3e   : > { %3436 = vmatpush3.bf16.msra.mxu0 %v3892_v9  ;;  %v3909_v26 = vld [vmem:[#allocation3 + $0xf0] sm:$0xff]   ;;  %v3913_v30 = vld [vmem:[#allocation3 + $0xf8] sm:$0xff]   ;;  %v3918_v42 = vld [vmem:[#allocation3 + $0x140] sm:$0xff]  }
  0x3f   : > { %3437 = vmatprep.subr.bf16.mxu0 %v3895_v12  ;;  %v3910_v27 = vld [vmem:[#allocation3 + $0xb0] sm:$0xff]   ;;  %v257_v31 = vld [vmem:[%s4293_s9 + $0x48] sm:$0xf]  ;;  %v266_v43 = vld [vmem:[%s4293_s9 + $0x90] sm:$0xf] }
  0x40   : > { %3476 = vmatpush3.bf16.msra.mxu1 %v3894_v11  ;;  %v3186_v33 = vcombine.low %v257_v31, %v4297_v32  ;;  %v3916_v34 = vld [vmem:[#allocation3 + $0xb8] sm:$0xff]   ;;  %v239_v35 = vld [vmem:[%s4293_s9] sm:$0xf]  ;;  %v4309_v44 = vld [vmem:[%s4293_s9 + $0x98] sm:$0xf]  ;;  %v406_v0 = vshrl.u32 %v266_v43, 16 }
  0x41   : > { %3477 = vmatprep.subr.bf16.mxu1 %v3897_v14  ;;  %v4302_v36 = vld [vmem:[%s4293_s9 + $0x8] sm:$0xf]  ;;  %v294_v37 = vshrl.u32 %v239_v35, 16  ;;  %v297_v38 = vshll.u32 %v239_v35, 16  ;;  %v3194_v47 = vcombine.low %v266_v43, %v4309_v44  ;;  %v3920_v48 = vld [vmem:[#allocation3 + $0x100] sm:$0xff]   ;;  %vm4314_vm2 = vmor %vm290_vm0, %vm291_vm1  ;;  %v409_v3 = vshll.u32 %v266_v43, 16 }
  0x42   : > { %3438 = vmatpush3.bf16.msra.mxu0 %v3896_v13  ;;  %1303 = vmatprep.mubr.bf16.mxu0 %v3186_v33  ;;  %v308_v39 = vshrl.u32 %v4302_v36, 16  ;;  %v311_v40 = vshll.u32 %v4302_v36, 16  ;;  %v3182_v41 = vcombine.low %v239_v35, %v4302_v36  ;;  %v240_v50 = vld [vmem:[%s4293_s9 + $0x4] sm:$0x1]  ;;  %v242_v51 = vld [vmem:[%s4293_s9 + $0xc] sm:$0x1]  ;;  %vm4663_vm9 = vmand %vm1737_vm3, %vm1738_vm4 }
  0x43   : > { %3439 = vmatprep.subr.bf16.mxu0 %v3899_v16  ;;  %v296_v45 = vrot.slane %v294_v37, 4  ;;  %v299_v46 = vrot.slane %v297_v38, 5  ;;  %1368 = vmatprep.mubr.bf16.mxu1 %v3194_v47  ;;  %v303_v53 = vshll.u32 %v240_v50, 16  ;;  %v317_v57 = vshll.u32 %v242_v51, 16  ;;  %v3921_v58 = vld [vmem:[#allocation3 + $0x1c0] sm:$0xff]   ;;  %v3923_v62 = vld [vmem:[#allocation3 + $0x148] sm:$0xff]   ;;  %vm4669_vm10 = vmand %vm1743_vm5, %vm1744_vm6 }
  0x44   : > { %3478 = vmatpush3.bf16.msra.mxu1 %v3898_v15  ;;  %v310_v49 = vrot.slane %v308_v39, 4  ;;  %v313_v54 = vrot.slane %v311_v40, 5  ;;  %v4319_v59 = vld [vmem:[%s4293_s9 + $0x58] sm:$0xf]  ;;  %v420_v5 = vshrl.u32 %v4309_v44, 16  ;;  %v3922_v7 = vld [vmem:[#allocation3 + $0x180] sm:$0xff]   ;;  %vm4688_vm11 = vmor %vm1939_vm7, %vm1940_vm8 }
  0x45   : > { %3479 = vmatprep.subr.bf16.mxu1 %v3901_v18  ;;  %v300_v52 = vor.u32 %v299_v46, %v296_v45  ;;  %v305_v60 = vrot.slane %v303_v53, 5  ;;  %v319_v63 = vrot.slane %v317_v57, 5  ;;  %v3924_v4 = vld [vmem:[#allocation3 + $0x108] sm:$0xff]   ;;  %v4329_v8 = vld [vmem:[%s4293_s9 + $0x60] sm:$0xf]  ;;  %v423_v9 = vshll.u32 %v4309_v44, 16 }
  0x46   : > { %3440 = vmatpush3.bf16.msra.mxu0 %v3900_v17  ;;  %v314_v61 = vor.u32 %v313_v54, %v310_v49  ;;  %v3925_v11 = vld [vmem:[#allocation3 + $0x1c8] sm:$0xff]   ;;  %v3187_v12 = vcombine.low %v4319_v59, %v4329_v8  ;;  %v4336_v13 = vld [vmem:[%s4293_s9 + $0x10] sm:$0xf]  ;;  %v422_v35 = vrot.slane %v420_v5, 4  ;;  %v3932_v44 = vld [vmem:[#allocation3 + $0x1d0] sm:$0xff]  }
  0x47   : > { %3441 = vmatprep.subr.bf16.mxu0 %v3903_v20  ;;  %v301_v56 = vrot.slane %v300_v52, 4  ;;  %v3927_v14 = vld [vmem:[#allocation3 + $0x188] sm:$0xff]   ;;  %v322_v16 = vshrl.u32 %v4336_v13, 16  ;;  %v325_v17 = vshll.u32 %v4336_v13, 16  ;;  %v425_v37 = vrot.slane %v423_v9, 5  ;;  %v3933_v46 = vld [vmem:[#allocation3 + $0x190] sm:$0xff]  }
  0x48   : > { %3480 = vmatpush3.bf16.msra.mxu1 %v3902_v19  ;;  %v315_v2 = vrot.slane %v314_v61, 4  ;;  %v4339_v15 = vld [vmem:[%s4293_s9 + $0x18] sm:$0xf]  ;;  %v246_v31 = vld [vmem:[%s4293_s9 + $0x1c] sm:$0x1]  ;;  %v3934_v51 = vld [vmem:[#allocation3 + $0x158] sm:$0xff]  }
  0x49   : > { %3481 = vmatprep.subr.bf16.mxu1 %v3905_v22  ;;  %v306_v1 = vsel %vm4314_vm2, %v301_v56, %v305_v60  ;;  %v336_v18 = vshrl.u32 %v4339_v15, 16  ;;  %v339_v19 = vshll.u32 %v4339_v15, 16  ;;  %v3183_v20 = vcombine.low %v4336_v13, %v4339_v15  ;;  %v3931_v22 = vld [vmem:[#allocation3 + $0x110] sm:$0xff]   ;;  %v3935_v54 = vld [vmem:[#allocation3 + $0x118] sm:$0xff]   ;;  %v4373_v61 = vld [vmem:[%s4293_s9 + $0x70] sm:$0xf] }
  0x4a   : > { %3442 = vmatpush3.bf16.msra.mxu0 %v3904_v21  ;;  %v4326_v6 = vsel %vm4314_vm2, %v315_v2, %v319_v63  ;;  %v3929_v21 = vld [vmem:[#allocation3 + $0x150] sm:$0xff]   ;;  %v324_v33 = vrot.slane %v322_v16, 4  ;;  %v345_v45 = vshll.u32 %v246_v31, 16  ;;  %v4370_v60 = vld [vmem:[%s4293_s9 + $0x68] sm:$0xf]  ;;  %v3940_v16 = vld [vmem:[#allocation3 + $0x160] sm:$0xff]  }
  0x4b   : > { %3443 = vmatprep.subr.bf16.mxu0 %v3907_v24  ;;  %v3190_v10 = vcombine.low %v306_v1, %v4326_v6  ;;  %v4349_v24 = vld [vmem:[%s4293_s9 + $0xa8] sm:$0xf]  ;;  %v341_v43 = vrot.slane %v339_v19, 5  ;;  %v3188_v1 = vcombine.low %v4370_v60, %v4373_v61  ;;  %v4059_v55 = vld [vmem:[%s5136_s3 + $0x260] sm:$0xff]  }
  0x4c   : > { %3482 = vmatpush3.bf16.msra.mxu1 %v3906_v23  ;;  %v270_v23 = vld [vmem:[%s4293_s9 + $0xa0] sm:$0xf]  ;;  %v347_v50 = vrot.slane %v345_v45, 5  ;;  %v448_v57 = vshrl.u32 %v4349_v24, 16  ;;  %v451_v63 = vshll.u32 %v4349_v24, 16  ;;  %v3938_v2 = vld [vmem:[#allocation3 + $0x198] sm:$0xff]  }
  0x4d   : > { %3483 = vmatprep.subr.bf16.mxu1 %v3909_v26  ;;  %v4353_v26 = vrot.slane %v409_v3, 5  ;;  %v4388_v5 = vld [vmem:[%s4293_s9 + $0x28] sm:$0xf]  ;;  %v3945_v45 = vld [vmem:[#allocation3 + $0x168] sm:$0xff]  }
  0x4e   : > { %3444 = vmatpush3.bf16.msra.mxu0 %v3908_v25  ;;  %v4351_v25 = vrot.slane %v406_v0, 4 }
  0x4f   : > { %3445 = vmatprep.subr.bf16.mxu0 %v3911_v28  ;;  %v437_v28 = vshll.u32 %v270_v23, 16 }
  0x50   : > { %3484 = vmatpush3.bf16.msra.mxu1 %v3910_v27  ;;  %v434_v27 = vshrl.u32 %v270_v23, 16  ;;  %v412_v56 = vor.u32 %v4353_v26, %v4351_v25  ;;  %v248_v25 = vld [vmem:[%s4293_s9 + $0x24] sm:$0x1] }
  0x51   : > { %3485 = vmatprep.subr.bf16.mxu1 %v3913_v30  ;;  %v244_v30 = vld [vmem:[%s4293_s9 + $0x14] sm:$0x1]  ;;  %v4360_v39 = vrot.slane %v437_v28, 5 }
  0x52   : > { %3446 = vmatpush3.bf16.msra.mxu0 %v3912_v29  ;;  %v3195_v29 = vcombine.low %v270_v23, %v4349_v24  ;;  %v4358_v38 = vrot.slane %v434_v27, 4  ;;  %v4402_v19 = vrot.slane %v412_v56, 4  ;;  %v3942_v24 = vld [vmem:[#allocation3 + $0x120] sm:$0xff]   ;;  %v4424_v56 = vld [vmem:[%s4293_s9 + $0x80] sm:$0xf] }
  0x53   : > { %3511 = vmatprep.subr.bf16.mxu0 %v3918_v42  ;;  %v338_v42 = vrot.slane %v336_v18, 4  ;;  %v4400_v18 = vld [vmem:[%s4293_s9 + $0xb8] sm:$0xf] }
  0x54   : > { %3486 = vmatpush3.bf16.msra.mxu1 %v3916_v34  ;;  %v327_v34 = vrot.slane %v325_v17, 5  ;;  %v274_v17 = vld [vmem:[%s4293_s9 + $0xb0] sm:$0xf] }
  0x55   : > { %1304 = vmatmul.mubr.bf16.vlgmr.msra.gmra.mrb[0].mxu0 %v3182_v41  ;;  %3551 = vmatprep.subr.bf16.mxu1 %v3921_v58  ;;  %v331_v41 = vshll.u32 %v244_v30, 16  ;;  %v342_v49 = vor.u32 %v341_v43, %v338_v42  ;;  %v3936_v58 = vld [vmem:[#allocation3 + $0x1d8] sm:$0xff]   ;;  %v3196_v23 = vcombine.low %v274_v17, %v4400_v18  ;;  %v462_v27 = vshrl.u32 %v274_v17, 16  ;;  %v3944_v43 = vld [vmem:[#allocation3 + $0x1a0] sm:$0xff]  }
  0x56   : > { %3512 = vmatpush3.bf16.msra.mxu0 %v3920_v48  ;;  %1311 = vmatprep.mubr.bf16.mxu0 %v3187_v12  ;;  %v328_v40 = vor.u32 %v327_v34, %v324_v33  ;;  %v367_v12 = vshll.u32 %v4388_v5, 16  ;;  %v465_v28 = vshll.u32 %v274_v17, 16  ;;  %v250_v30 = vld [vmem:[%s4293_s9 + $0x2c] sm:$0x1]  ;;  %v359_v34 = vshll.u32 %v248_v25, 16  ;;  %v3953_v25 = vld [vmem:[#allocation3 + $0x130] sm:$0xff]  }
  0x57   : > { %3513 = vmatprep.subr.bf16.mxu0 %v3923_v62  ;;  %1369 = vmatmul.mubr.bf16.vlgmr.msra.gmra.mrb[0].mxu1 %v3190_v10  ;;  %v333_v48 = vrot.slane %v331_v41, 5  ;;  %v343_v53 = vrot.slane %v342_v49, 4  ;;  %v426_v62 = vor.u32 %v425_v37, %v422_v35  ;;  %v364_v10 = vshrl.u32 %v4388_v5, 16  ;;  %v3947_v49 = vld [vmem:[#allocation3 + $0x1e8] sm:$0xff]  }
  0x58   : > { %3552 = vmatpush3.bf16.msra.mxu1 %v3922_v7  ;;  %1376 = vmatprep.mubr.bf16.mxu1 %v3195_v29  ;;  %v329_v47 = vrot.slane %v328_v40, 4  ;;  %v476_v29 = vshrl.u32 %v4400_v18, 16  ;;  %v369_v37 = vrot.slane %v367_v12, 5  ;;  %v361_v41 = vrot.slane %v359_v34, 5 }
  0x59   : > { %3553 = vmatprep.subr.bf16.mxu1 %v3925_v11  ;;  %v4378_v0 = vsel %vm4314_vm2, %v343_v53, %v347_v50  ;;  %v440_v11 = vor.u32 %v4360_v39, %v4358_v38  ;;  %v366_v35 = vrot.slane %v364_v10, 4  ;;  %v373_v38 = vshll.u32 %v250_v30, 16  ;;  %v3943_v39 = vld [vmem:[#allocation3 + $0x1e0] sm:$0xff]  }
  0x5a   : > { %3514 = vmatpush3.bf16.msra.mxu0 %v3924_v4  ;;  %v4364_v52 = vsel %vm4314_vm2, %v329_v47, %v333_v48  ;;  %v4385_v4 = vld [vmem:[%s4293_s9 + $0x20] sm:$0xf]  ;;  %v3946_v48 = vld [vmem:[#allocation3 + $0x128] sm:$0xff]   ;;  %v252_v30 = vld [vmem:[%s4293_s9 + $0x34] sm:$0x1] }
  0x5b   : > { %3515 = vmatprep.subr.bf16.mxu0 %v3929_v21  ;;  %v3191_v3 = vcombine.low %v4364_v52, %v4378_v0  ;;  %v350_v7 = vshrl.u32 %v4385_v4, 16  ;;  %v353_v9 = vshll.u32 %v4385_v4, 16  ;;  %v450_v21 = vrot.slane %v448_v57, 4 }
  0x5c   : > { %3554 = vmatpush3.bf16.msra.mxu1 %v3927_v14  ;;  %v3184_v14 = vcombine.low %v4385_v4, %v4388_v5  ;;  %v4410_v31 = vrot.slane %v440_v11, 4  ;;  %v370_v42 = vor.u32 %v369_v37, %v366_v35  ;;  %v479_v57 = vshll.u32 %v4400_v18, 16 }
  0x5d   : > { %1312 = vmatmul.mubr.bf16.gmra.mrb[4].mxu0 %v3183_v20  ;;  %3555 = vmatprep.subr.bf16.mxu1 %v3932_v44  ;;  %v4404_v20 = vrot.slane %v426_v62, 4  ;;  %v352_v26 = vrot.slane %v350_v7, 4  ;;  %v355_v33 = vrot.slane %v353_v9, 5  ;;  %v375_v44 = vrot.slane %v373_v38, 5 }
  0x5e   : > { %3516 = vmatpush3.bf16.msra.mxu0 %v3931_v22  ;;  %1319 = vmatprep.mubr.bf16.mxu0 %v3188_v1  ;;  %v453_v22 = vrot.slane %v451_v63, 5  ;;  %v371_v47 = vrot.slane %v370_v42, 4  ;;  %v3949_v63 = vld [vmem:[#allocation3 + $0x1a8] sm:$0xff]   ;;  %v4432_v1 = vld [vmem:[%s4293_s9 + $0x30] sm:$0xf]  ;;  %v4439_v7 = vrot.slane %v465_v28, 5 }
  0x5f   : > { %3517 = vmatprep.subr.bf16.mxu0 %v3934_v51  ;;  %1377 = vmatmul.mubr.bf16.gmra.mrb[4].mxu1 %v3191_v3  ;;  %v356_v40 = vor.u32 %v355_v33, %v352_v26  ;;  %v4413_v51 = vld [vmem:[%s4293_s9 + $0x78] sm:$0xf]  ;;  %v4437_v3 = vrot.slane %v462_v27, 4  ;;  %v378_v9 = vshrl.u32 %v4432_v1, 16  ;;  %v381_v11 = vshll.u32 %v4432_v1, 16 }
  0x60   : > { %3556 = vmatpush3.bf16.msra.mxu1 %v3933_v46  ;;  %1384 = vmatprep.mubr.bf16.mxu1 %v3196_v23  ;;  %v454_v50 = vor.u32 %v453_v22, %v450_v21  ;;  %v3189_v62 = vcombine.low %v4413_v51, %v4424_v56  ;;  %v4451_v21 = vld [vmem:[%s4293_s9 + $0xc8] sm:$0xf]  ;;  %v4453_v22 = vrot.slane %v476_v29, 4  ;;  %v4455_v23 = vrot.slane %v479_v57, 5  ;;  %v254_v33 = vld [vmem:[%s4293_s9 + $0x3c] sm:$0x1] }
  0x61   : > { %3557 = vmatprep.subr.bf16.mxu1 %v3936_v58  ;;  %v357_v46 = vrot.slane %v356_v40, 4  ;;  %v380_v26 = vrot.slane %v378_v9, 4  ;;  %v504_v34 = vshrl.u32 %v4451_v21, 16  ;;  %v507_v35 = vshll.u32 %v4451_v21, 16  ;;  %v3958_v57 = vld [vmem:[#allocation3 + $0x1f8] sm:$0xff]  }
  0x62   : > { %3518 = vmatpush3.bf16.msra.mxu0 %v3935_v54  ;;  %v4421_v54 = vsel %vm4314_vm2, %v371_v47, %v375_v44  ;;  %v4442_v10 = vrot.slane %v454_v50, 4  ;;  %v383_v29 = vrot.slane %v381_v11, 5  ;;  %v387_v37 = vshll.u32 %v252_v30, 16  ;;  %v3955_v44 = vld [vmem:[#allocation3 + $0x1b0] sm:$0xff]   ;;  %v3956_v47 = vld [vmem:[#allocation3 + $0x178] sm:$0xff]  }
  0x63   : > { %3519 = vmatprep.subr.bf16.mxu0 %v3940_v16  ;;  %v4417_v53 = vsel %vm4314_vm2, %v357_v46, %v361_v41  ;;  %v278_v16 = vld [vmem:[%s4293_s9 + $0xc0] sm:$0xf]  ;;  %v401_v40 = vshll.u32 %v254_v33, 16  ;;  %v3210_v9 = vcombine.low %v4297_v32, %v4319_v59  ;;  %v468_v33 = vor.u32 %v4439_v7, %v4437_v3  ;;  %v275_v7 = vld [vmem:[%s4293_s9 + $0xb4] sm:$0x1] }
  0x64   : > { %3558 = vmatpush3.bf16.msra.mxu1 %v3938_v2  ;;  %v3192_v58 = vcombine.low %v4417_v53, %v4421_v54  ;;  %v4435_v2 = vld [vmem:[%s4293_s9 + $0x38] sm:$0xf]  ;;  %v490_v27 = vshrl.u32 %v278_v16, 16  ;;  %v493_v28 = vshll.u32 %v278_v16, 16  ;;  %v3954_v41 = vld [vmem:[#allocation3 + $0x1f0] sm:$0xff]   ;;  %v384_v42 = vor.u32 %v383_v29, %v380_v26 }
  0x65   : > { %1320 = vmatmul.mubr.bf16.gmra.mrb[8].mxu0 %v3184_v14  ;;  %3559 = vmatprep.subr.bf16.mxu1 %v3943_v39  ;;  %v3185_v12 = vcombine.low %v4432_v1, %v4435_v2  ;;  %v3951_v14 = vld [vmem:[#allocation3 + $0x170] sm:$0xff]   ;;  %v392_v17 = vshrl.u32 %v4435_v2, 16  ;;  %v395_v18 = vshll.u32 %v4435_v2, 16  ;;  %v403_v46 = vrot.slane %v401_v40, 5 }
  0x66   : > { %3520 = vmatpush3.bf16.msra.mxu0 %v3942_v24  ;;  %1327 = vmatprep.mubr.bf16.mxu0 %v3189_v62  ;;  %v3197_v24 = vcombine.low %v278_v16, %v4451_v21  ;;  %v267_v62 = vld [vmem:[%s4293_s9 + $0x94] sm:$0x1]  ;;  %v3959_v16 = vld [vmem:[#allocation3 + $0x1b8] sm:$0xff]   ;;  %v495_v21 = vrot.slane %v493_v28, 5  ;;  %v3960_v32 = vld [vmem:[%s4293_s9 + $0xd8] ss:$8 sps:$4 sm:$0xff]   ;;  %v482_v29 = vor.u32 %v4455_v23, %v4453_v22  ;;  %v3211_v3 = vcombine.low %v4329_v8, %v4370_v60 }
  0x67   : > { %3521 = vmatprep.subr.bf16.mxu0 %v3945_v45  ;;  %1385 = vmatmul.mubr.bf16.gmra.mrb[8].mxu1 %v3192_v58  ;;  %v394_v38 = vrot.slane %v392_v17, 4  ;;  %v397_v39 = vrot.slane %v395_v18, 5  ;;  %v3961_v17 = vld [vmem:[#allocation3 + $0x200] sm:$0xff]   ;;  %v492_v18 = vrot.slane %v490_v27, 4  ;;  %v271_v27 = vld [vmem:[%s4293_s9 + $0xa4] sm:$0x1] }
  0x68   : > { %3560 = vmatpush3.bf16.msra.mxu1 %v3944_v43  ;;  %1392 = vmatprep.mubr.bf16.mxu1 %v3197_v24  ;;  %v389_v43 = vrot.slane %v387_v37, 5  ;;  %v273_v28 = vld [vmem:[%s4293_s9 + $0xac] sm:$0x1]  ;;  %v506_v37 = vrot.slane %v504_v34, 4  ;;  %v277_v22 = vld [vmem:[%s4293_s9 + $0xbc] sm:$0x1] }
  0x69   : > { %3561 = vmatprep.subr.bf16.mxu1 %v3947_v49  ;;  %v398_v45 = vor.u32 %v397_v39, %v394_v38  ;;  %v3957_v49 = vld [vmem:[#allocation3 + $0x138] sm:$0xff]   ;;  %v443_v39 = vshll.u32 %v271_v27, 16  ;;  %v457_v40 = vshll.u32 %v273_v28, 16  ;;  %v469_v23 = vrot.slane %v468_v33, 4  ;;  %v3965_v60 = vld [vmem:[#allocation3 + $0x210] sm:$0xff]  }
  0x6a   : > { %3522 = vmatpush3.bf16.msra.mxu0 %v3946_v48  ;;  %v385_v48 = vrot.slane %v384_v42, 4  ;;  %v496_v42 = vor.u32 %v495_v21, %v492_v18  ;;  %v483_v34 = vrot.slane %v482_v29, 4  ;;  %v255_v27 = vld [vmem:[%s4293_s9 + $0x40] sm:$0xf]  ;;  %v3208_v29 = vcombine.low %v4388_v5, %v4432_v1 }
  0x6b   : > { %3523 = vmatprep.subr.bf16.mxu0 %v3951_v14  ;;  %v399_v50 = vrot.slane %v398_v45, 4  ;;  %v485_v45 = vshll.u32 %v277_v22, 16  ;;  %v521_v28 = vshll.u32 %v255_v27, 16  ;;  %v3209_v5 = vcombine.low %v4435_v2, %v255_v27  ;;  %v3979_v2 = vld [vmem:[%s5136_s3 + $0xc0] sm:$0xff]   ;;  %v3986_v22 = vld [vmem:[%s5136_s3 + $0x90] sm:$0xff]  }
  0x6c   : > { %3562 = vmatpush3.bf16.msra.mxu1 %v3949_v63  ;;  %v4464_v58 = vsel %vm4314_vm2, %v385_v48, %v389_v43  ;;  %v269_v63 = vld [vmem:[%s4293_s9 + $0x9c] sm:$0x1]  ;;  %v445_v43 = vrot.slane %v443_v39, 5  ;;  %v3964_v48 = vld [vmem:[%s4293_s9 + $0xe8] ss:$8 sps:$4 sm:$0xff]   ;;  %v3975_v39 = vld [vmem:[#allocation3 + $0x230] sm:$0xff]  }
  0x6d   : > { %1328 = vmatmul.mubr.bf16.gmra.mrb[12].mxu0 %v3185_v12  ;;  %3563 = vmatprep.subr.bf16.mxu1 %v3954_v41  ;;  %v4472_v11 = vsel %vm4314_vm2, %v399_v50, %v403_v46  ;;  %v415_v12 = vshll.u32 %v267_v62, 16  ;;  %v429_v14 = vshll.u32 %v269_v63, 16  ;;  %v3963_v41 = vld [vmem:[#allocation3 + $0x208] sm:$0xff]   ;;  %v497_v46 = vrot.slane %v496_v42, 4 }
  0x6e   : > { %3524 = vmatpush3.bf16.msra.mxu0 %v3953_v25  ;;  %v3193_v24 = vcombine.low %v4464_v58, %v4472_v11  ;;  %v487_v50 = vrot.slane %v485_v45, 5  ;;  %v3214_v42 = vcombine.low %v4326_v6, %v4364_v52  ;;  %v3992_v45 = vld [vmem:[%s5136_s3 + $0x10] sm:$0xff]  }
  0x6f   : > { %3525 = vmatprep.subr.bf16.mxu0 %v3956_v47  ;;  %v417_v25 = vrot.slane %v415_v12, 5  ;;  %v431_v26 = vrot.slane %v429_v14, 5  ;;  %v3968_v12 = vld [vmem:[#allocation3 + $0x218] sm:$0xff]  }
  0x70   : > { %3564 = vmatpush3.bf16.msra.mxu1 %v3955_v44  ;;  %v459_v44 = vrot.slane %v457_v40, 5 }
  0x71   : > { %3565 = vmatprep.subr.bf16.mxu1 %v3958_v57  ;;  %1393 = vmatmul.mubr.bf16.gmra.mrb[12].mxu1 %v3193_v24  ;;  %v418_v59 = vsel %vm4314_vm2, %v4402_v19, %v417_v25  ;;  %v432_v30 = vsel %vm4314_vm2, %v4404_v20, %v431_v26  ;;  %v509_v19 = vrot.slane %v507_v35, 5  ;;  %v3206_v20 = vcombine.low %v4302_v36, %v4336_v13  ;;  %v279_v57 = vld [vmem:[%s4293_s9 + $0xc4] sm:$0x1]  ;;  %v3970_v25 = vld [vmem:[#allocation3 + $0x220] sm:$0xff]  }
  0x72   : > { %3526 = vmatpush3.bf16.msra.mxu0 %v3957_v49  ;;  %1498 = vmatprep.mubr.bf16.mxu1 %v3210_v9  ;;  %v3202_v38 = vcombine.low %v418_v59, %v432_v30  ;;  %v446_v35 = vsel %vm4314_vm2, %v4410_v31, %v445_v43  ;;  %v460_v36 = vsel %vm4314_vm2, %v4442_v10, %v459_v44  ;;  %v471_v13 = vshll.u32 %v275_v7, 16  ;;  %v281_v31 = vld [vmem:[%s4293_s9 + $0xcc] sm:$0x1]  ;;  %v256_v26 = vld [vmem:[%s4293_s9 + $0x44] sm:$0x1] }
  0x73   : > { %3803 = vmatprep.subr.bf16.mxu0 %v3961_v17  ;;  %v3203_v8 = vcombine.low %v446_v35, %v460_v36  ;;  %v510_v47 = vor.u32 %v509_v19, %v506_v37  ;;  %v488_v10 = vsel %vm4314_vm2, %v483_v34, %v487_v50  ;;  %v499_v63 = vshll.u32 %v279_v57, 16  ;;  %v3974_v19 = vld [vmem:[%s4293_s9 + $0x108] ss:$8 sps:$4 sm:$0xff]   ;;  %v3989_v35 = vld [vmem:[%s5136_s3 + $0xd8] sm:$0xff]   ;;  %v3999_v50 = vld [vmem:[%s5136_s3 + $0x60] sm:$0xff]  }
  0x74   : > { %3566 = vmatpush3.bf16.msra.mxu1 %v3959_v16  ;;  %1433 = vmatprep.mubr.bf16.mxu0 %v3202_v38  ;;  %v473_v49 = vrot.slane %v471_v13, 5  ;;  %v513_v9 = vshll.u32 %v281_v31, 16  ;;  %v3212_v24 = vcombine.low %v4373_v61, %v4413_v51  ;;  %v3973_v61 = vld [vmem:[#allocation3 + $0x228] sm:$0xff]   ;;  %v527_v51 = vshll.u32 %v256_v26, 16  ;;  %v3988_v34 = vld [vmem:[%s5136_s3 + $0x8] sm:$0xff]   ;;  %v3991_v13 = vld [vmem:[%s5136_s3 + $0x50] sm:$0xff]  }
  0x75   : > { %1434 = vmatmul.mubr.bf16.vlgmr.msra.gmra.mrb[16].mxu0 %v3960_v32  ;;  %v511_v16 = vrot.slane %v510_v47, 4  ;;  %v501_v18 = vrot.slane %v499_v63, 5  ;;  %v3969_v32 = vld [vmem:[%s4293_s9 + $0xf8] ss:$8 sps:$4 sm:$0xff]   ;;  %v523_v38 = vrot.slane %v521_v28, 5  ;;  %v3215_v43 = vcombine.low %v4378_v0, %v4417_v53  ;;  %v3981_v53 = vld [vmem:[%s5136_s3 + $0xc8] sm:$0xff]  }
  0x76   : > { %3804 = vmatpush3.bf16.msra.mxu0 %v3961_v17  ;;  %1441 = vmatprep.mubr.bf16.mxu0 %v3203_v8  ;;  %v474_v62 = vsel %vm4314_vm2, %v469_v23, %v473_v49  ;;  %v3207_v17 = vcombine.low %v4339_v15, %v4385_v4  ;;  %v515_v21 = vrot.slane %v513_v9, 5  ;;  %v265_v15 = vld [vmem:[%s4293_s9 + $0x88] sm:$0xf]  ;;  %v518_v4 = vshrl.u32 %v255_v27, 16  ;;  %v3980_v0 = vld [vmem:[%s5136_s3 + $0x80] sm:$0xff]   ;;  %v3990_v36 = vld [vmem:[%s5136_s3 + $0x98] sm:$0xff]  }
  0x77   : > { %3805 = vmatprep.subr.bf16.mxu0 %v3963_v41  ;;  %v3204_v14 = vcombine.low %v474_v62, %v488_v10  ;;  %v502_v59 = vsel %vm4314_vm2, %v497_v46, %v501_v18  ;;  %v3213_v40 = vcombine.low %v4424_v56, %v265_v15  ;;  %v529_v1 = vrot.slane %v527_v51, 5  ;;  %v3987_v23 = vld [vmem:[%s5136_s3 + $0x48] sm:$0xff]   ;;  %v3993_v8 = vld [vmem:[%s5136_s3 + $0xe0] sm:$0xff]   ;;  %v3995_v46 = vld [vmem:[%s5136_s3 + $0x58] sm:$0xff]  }
  0x78   : > { %v516_v30 = vsel %vm4314_vm2, %v511_v16, %v515_v21  ;;  %v520_v37 = vrot.slane %v518_v4, 4  ;;  %v3216_v44 = vcombine.low %v4421_v54, %v4464_v58  ;;  %v3982_v54 = vld [vmem:[%s5136_s3 + $0x88] sm:$0xff]   ;;  %v3983_v58 = vld [vmem:[%s5136_s3 + $0x40] sm:$0xff]   ;;  %v4171_v7 = vmov 0   ;;  %v3996_v47 = vld [vmem:[%s5136_s3 + $0x18] sm:$0xff]  }
  0x79   : > { %1499 = vmatmul.mubr.bf16.vlgmr.msra.gmra.mrb[16].mxu1 %v3206_v20  ;;  %v3205_v33 = vcombine.low %v502_v59, %v516_v30  ;;  %1610 = vst [vmem:[#allocation2 + $0x18] sm:$0xf] %v4171_v7  ;;  %1611 = vst [vmem:[#allocation2 + $0x1c] sm:$0x1] %v4171_v7  ;;  %3603 = vmatprep.subr.bf16.mxu1 %v3983_v58  ;;  %v3998_v49 = vld [vmem:[%s5136_s3 + $0xa8] sm:$0xff]   ;;  %v4000_v57 = vld [vmem:[%s5136_s3 + $0x20] sm:$0xff]  }
  0x7a   : > { %1506 = vmatprep.mubr.bf16.mxu1 %v3211_v3  ;;  %3806 = vmatpush3.bf16.msra.mxu0 %v3963_v41  ;;  %v3978_v41 = vld [vmem:[#allocation3 + $0x238] sm:$0xff]   ;;  %v524_v20 = vor.u32 %v523_v38, %v520_v37  ;;  %v3985_v3 = vld [vmem:[%s5136_s3 + $0xd0] sm:$0xff]   ;;  %1604 = vst [vmem:[#allocation2] sm:$0xf] %v4171_v7  ;;  %1605 = vst [vmem:[#allocation2 + $0x4] sm:$0x1] %v4171_v7 }
  0x7b   : > { %3807 = vmatprep.subr.bf16.mxu0 %v3965_v60  ;;  %1606 = vst [vmem:[#allocation2 + $0x8] sm:$0xf] %v4171_v7  ;;  %1607 = vst [vmem:[#allocation2 + $0xc] sm:$0x1] %v4171_v7  ;;  %v4001_v31 = vld [vmem:[%s5136_s3 + $0xf0] sm:$0xff]   ;;  %v4003_v10 = vld [vmem:[%s5136_s3 + $0x68] sm:$0xff]  }
  0x7c   : > { %v525_v56 = vrot.slane %v524_v20, 4  ;;  %1608 = vst [vmem:[#allocation2 + $0x10] sm:$0xf] %v4171_v7  ;;  %1609 = vst [vmem:[#allocation2 + $0x14] sm:$0x1] %v4171_v7  ;;  %v4002_v62 = vld [vmem:[%s5136_s3 + $0xb0] sm:$0xff]  }
  0x7d   : > { %1442 = vmatmul.mubr.bf16.gmra.mrb[20].mxu0 %v3964_v48  ;;  %1612 = vst [vmem:[#allocation2 + $0x20] sm:$0xf] %v4171_v7  ;;  %1613 = vst [vmem:[#allocation2 + $0x24] sm:$0x1] %v4171_v7  ;;  %v3997_v48 = vld [vmem:[%s5136_s3 + $0xe8] sm:$0xff]   ;;  %v4005_v9 = vld [vmem:[%s5136_s3 + $0xf8] sm:$0xff]  }
  0x7e   : > { %3808 = vmatpush3.bf16.msra.mxu0 %v3965_v60  ;;  %1449 = vmatprep.mubr.bf16.mxu0 %v3204_v14  ;;  %v530_v6 = vsel %vm4314_vm2, %v525_v56, %v529_v1  ;;  %1614 = vst [vmem:[#allocation2 + $0x28] sm:$0xf] %v4171_v7  ;;  %1615 = vst [vmem:[#allocation2 + $0x2c] sm:$0x1] %v4171_v7  ;;  %v3994_v60 = vld [vmem:[%s5136_s3 + $0xa0] sm:$0xff]   ;;  %v4004_v63 = vld [vmem:[%s5136_s3 + $0x28] sm:$0xff]  }
  0x7f   : > { %3809 = vmatprep.subr.bf16.mxu0 %v3968_v12  ;;  %v3217_v52 = vcombine.low %v4472_v11, %v530_v6  ;;  %v3984_v11 = vld [vmem:[%s5136_s3] sm:$0xff]   ;;  %1616 = vst [vmem:[#allocation2 + $0x30] sm:$0xf] %v4171_v7  ;;  %1617 = vst [vmem:[#allocation2 + $0x34] sm:$0x1] %v4171_v7  ;;  %v4007_v14 = vld [vmem:[%s5136_s3 + $0x70] sm:$0xff]  }
  0x80   : > { %1618 = vst [vmem:[#allocation2 + $0x38] sm:$0xf] %v4171_v7  ;;  %1619 = vst [vmem:[#allocation2 + $0x3c] sm:$0x1] %v4171_v7  ;;  %3604 = vmatpush3.bf16.msra.mxu1 %v3984_v11  ;;  %v4009_v16 = vld [vmem:[%s5136_s3 + $0x30] sm:$0xff]   ;;  %v4013_v18 = vld [vmem:[%s5136_s3 + $0x78] sm:$0xff]  }
  0x81   : > { %1507 = vmatmul.mubr.bf16.gmra.mrb[20].mxu1 %v3207_v17  ;;  %1620 = vst [vmem:[#allocation2 + $0x40] sm:$0xf] %v4171_v7  ;;  %1621 = vst [vmem:[#allocation2 + $0x44] sm:$0x1] %v4171_v7  ;;  %3605 = vmatprep.subr.bf16.mxu1 %v3987_v23  ;;  %v4010_v17 = vld [vmem:[%s5136_s3 + $0x1c0] sm:$0xff]   ;;  %v4014_v21 = vld [vmem:[%s5136_s3 + $0x38] sm:$0xff]  }
  0x82   : > { %1514 = vmatprep.mubr.bf16.mxu1 %v3212_v24  ;;  %3810 = vmatpush3.bf16.msra.mxu0 %v3968_v12  ;;  %1622 = vst [vmem:[#allocation2 + $0x48] sm:$0xf] %v4171_v7  ;;  %1623 = vst [vmem:[#allocation2 + $0x4c] sm:$0x1] %v4171_v7  ;;  %v4006_v12 = vld [vmem:[%s5136_s3 + $0xb8] sm:$0xff]   ;;  %v4018_v24 = vld [vmem:[%s5136_s3 + $0x140] sm:$0xff]  }
  0x83   : > { %3811 = vmatprep.subr.bf16.mxu0 %v3970_v25  ;;  %v3218_v15 = vld [vmem:[%s5135_s2] ss:$0 sm:$0xff] }
  0x84   : > { %3606 = vmatpush3.bf16.msra.mxu1 %v3988_v34 }
  0x85   : > { %1450 = vmatmul.mubr.bf16.gmra.mrb[24].mxu0 %v3969_v32  ;;  %3607 = vmatprep.subr.bf16.mxu1 %v3991_v13 }
  0x86   : > { %3812 = vmatpush3.bf16.msra.mxu0 %v3970_v25  ;;  %1457 = vmatprep.mubr.bf16.mxu0 %v3205_v33 }
  0x87   : > { %3813 = vmatprep.subr.bf16.mxu0 %v3973_v61 }
  0x88   : > { %3608 = vmatpush3.bf16.msra.mxu1 %v3992_v45 }
  0x89   : > { %1515 = vmatmul.mubr.bf16.gmra.mrb[24].mxu1 %v3208_v29  ;;  %3609 = vmatprep.subr.bf16.mxu1 %v3995_v46 }
  0x8a   : > { %1522 = vmatprep.mubr.bf16.mxu1 %v3213_v40  ;;  %3814 = vmatpush3.bf16.msra.mxu0 %v3973_v61 }
  0x8b   : > { %3815 = vmatprep.subr.bf16.mxu0 %v3975_v39 }
  0x8c   : > { %3610 = vmatpush3.bf16.msra.mxu1 %v3996_v47 }
  0x8d   : > { %1458 = vmatmul.mubr.bf16.gmra.mrb[28].mxu0 %v3974_v19  ;;  %3611 = vmatprep.subr.bf16.mxu1 %v3999_v50 }
  0x8e   : > { %3816 = vmatpush3.bf16.msra.mxu0 %v3975_v39  ;;  %3819 = vmatprep.mubr.bf16.mxu0 %v3214_v42 }
  0x8f   : > { %3817 = vmatprep.subr.bf16.mxu0 %v3978_v41 }
  0x90   : > { %3612 = vmatpush3.bf16.msra.mxu1 %v4000_v57 }
  0x91   : > { %1523 = vmatmul.mubr.bf16.gmra.mrb[28].mxu1 %v3209_v5  ;;  %3613 = vmatprep.subr.bf16.mxu1 %v4003_v10 }
  0x92   : > { %3818 = vmatpush3.bf16.msra.mxu0 %v3978_v41 }
  0x93   : > { %3643 = vmatprep.subr.bf16.mxu0 %v3979_v2 }
  0x94   : > { %3614 = vmatpush3.bf16.msra.mxu1 %v4004_v63 }
  0x95   : > { %3820 = vmatmul.mubr.bf16.vlgmr.msra.gmra.mrb[32].mxu0 %v3215_v43  ;;  %3615 = vmatprep.subr.bf16.mxu1 %v4007_v14 }
  0x96   : > { %3823 = vmatprep.mubr.bf16.mxu0 %v3216_v44  ;;  %3644 = vmatpush3.bf16.msra.mxu0 %v3980_v0 }
  0x97   : > { %3645 = vmatprep.subr.bf16.mxu0 %v3981_v53 }
  0x98   : > { %3616 = vmatpush3.bf16.msra.mxu1 %v4009_v16 }
  0x99   : > { %3617 = vmatprep.subr.bf16.mxu1 %v4013_v18 }
  0x9a   : > { %3646 = vmatpush3.bf16.msra.mxu0 %v3982_v54 }
  0x9b   : > { %3647 = vmatprep.subr.bf16.mxu0 %v3985_v3 }
  0x9c   : > { %3618 = vmatpush3.bf16.msra.mxu1 %v4014_v21 }
  0x9d   : > { %3824 = vmatmul.mubr.bf16.gmra.mrb[36].mxu0 %v3217_v52  ;;  %3683 = vmatprep.subr.bf16.mxu1 %v4018_v24 }
  0x9e   : > { %3648 = vmatpush3.bf16.msra.mxu0 %v3986_v22 }
  0x9f   : > { %3649 = vmatprep.subr.bf16.mxu0 %v3989_v35 }
  0xa2   : > { %3650 = vmatpush3.bf16.msra.mxu0 %v3990_v36 }
  0xa3   : > { %3651 = vmatprep.subr.bf16.mxu0 %v3993_v8 }
  0xa6   : > { %3652 = vmatpush3.bf16.msra.mxu0 %v3994_v60 }
  0xa7   : > { %3653 = vmatprep.subr.bf16.mxu0 %v3997_v48 }
  0xaa   : > { %3654 = vmatpush3.bf16.msra.mxu0 %v3998_v49 }
  0xab   : > { %3655 = vmatprep.subr.bf16.mxu0 %v4001_v31 }
  0xae   : > { %3656 = vmatpush3.bf16.msra.mxu0 %v4002_v62 }
  0xaf   : > { %3657 = vmatprep.subr.bf16.mxu0 %v4005_v9 }
  0xb2   : > { %3658 = vmatpush3.bf16.msra.mxu0 %v4006_v12 }
  0xb3   : > { %3723 = vmatprep.subr.bf16.mxu0 %v4010_v17 }
 0x128   : > { %v3447_v25 = vpop.f32.mrb[0].mxu0 }
 0x129   : > { %v3448_v26 = vpop.f32.mrb[1].mxu0 }
 0x12a   : > { %v3449_v32 = vadd.f32 %v3448_v26, %v3447_v25  ;;  %v3450_v59 = vpop.f32.mrb[2].mxu0  ;;  %v3487_v28 = vpop.f32.mrb[0].mxu1 }
 0x12b   : > { %v3451_v30 = vpop.f32.mrb[3].mxu0  ;;  %v3488_v61 = vpop.f32.mrb[1].mxu1 }
 0x12c   : > { %v3452_v27 = vadd.f32 %v3451_v30, %v3450_v59  ;;  %v1306_v4 = vadd.f32 %v3449_v32, %v3218_v15  ;;  %v3489_v33 = vadd.f32 %v3488_v61, %v3487_v28  ;;  %v3490_v29 = vpop.f32.mrb[2].mxu1 }
 0x12d   : > { %v3491_v38 = vpop.f32.mrb[3].mxu1 }
 0x12e   : > { %v1309_v51 = vadd.f32 %v3452_v27, %v3218_v15  ;;  %v1371_v40 = vadd.f32 %v3489_v33, %v1306_v4  ;;  %v3492_v19 = vadd.f32 %v3491_v38, %v3490_v29 }
 0x130   : > { %v3453_v37 = vpop.f32.mrb[4].mxu0  ;;  %v1374_v5 = vadd.f32 %v3492_v19, %v1309_v51 }
 0x131   : > { %v3454_v39 = vpop.f32.mrb[5].mxu0 }
 0x132   : > { %v3455_v41 = vadd.f32 %v3454_v39, %v3453_v37  ;;  %v3456_v42 = vpop.f32.mrb[6].mxu0  ;;  %v3493_v43 = vpop.f32.mrb[4].mxu1 }
 0x133   : > { %v3457_v20 = vpop.f32.mrb[7].mxu0  ;;  %v3494_v44 = vpop.f32.mrb[5].mxu1 }
 0x134   : > { %v3458_v56 = vadd.f32 %v3457_v20, %v3456_v42  ;;  %v1314_v1 = vadd.f32 %v3455_v41, %v3218_v15  ;;  %v3495_v52 = vadd.f32 %v3494_v44, %v3493_v43  ;;  %v3496_v2 = vpop.f32.mrb[6].mxu1 }
 0x135   : > { %v3497_v53 = vpop.f32.mrb[7].mxu1 }
 0x136   : > { %v1317_v6 = vadd.f32 %v3458_v56, %v3218_v15  ;;  %v1379_v58 = vadd.f32 %v3495_v52, %v1314_v1  ;;  %v3498_v11 = vadd.f32 %v3497_v53, %v3496_v2 }
 0x138   : > { %v3459_v0 = vpop.f32.mrb[8].mxu0  ;;  %v1382_v23 = vadd.f32 %v3498_v11, %v1317_v6 }
 0x139   : > { %v3460_v54 = vpop.f32.mrb[9].mxu0 }
 0x13a   : > { %v3461_v3 = vadd.f32 %v3460_v54, %v3459_v0  ;;  %v3462_v7 = vpop.f32.mrb[10].mxu0  ;;  %v3499_v36 = vpop.f32.mrb[8].mxu1 }
 0x13b   : > { %v3463_v22 = vpop.f32.mrb[11].mxu0  ;;  %v3500_v13 = vpop.f32.mrb[9].mxu1 }
 0x13c   : > { %v3464_v34 = vadd.f32 %v3463_v22, %v3462_v7  ;;  %v1322_v35 = vadd.f32 %v3461_v3, %v3218_v15  ;;  %v3501_v8 = vadd.f32 %v3500_v13, %v3499_v36  ;;  %v3502_v60 = vpop.f32.mrb[10].mxu1 }
 0x13d   : > { %v3503_v47 = vpop.f32.mrb[11].mxu1 }
 0x13e   : > { %v1325_v45 = vadd.f32 %v3464_v34, %v3218_v15  ;;  %v1387_v49 = vadd.f32 %v3501_v8, %v1322_v35  ;;  %v3504_v50 = vadd.f32 %v3503_v47, %v3502_v60 }
 0x140   : > { %v3465_v46 = vpop.f32.mrb[12].mxu0  ;;  %v1390_v10 = vadd.f32 %v3504_v50, %v1325_v45 }
 0x141   : > { %v3466_v48 = vpop.f32.mrb[13].mxu0 }
 0x142   : > { %v3467_v57 = vadd.f32 %v3466_v48, %v3465_v46  ;;  %v3468_v31 = vpop.f32.mrb[14].mxu0 }
 0x143   : > { %v3469_v62 = vpop.f32.mrb[15].mxu0 }
 0x144   : > { %v3470_v63 = vadd.f32 %v3469_v62, %v3468_v31  ;;  %v1330_v9 = vadd.f32 %v3467_v57, %v3218_v15  ;;  %v3505_v12 = vpop.f32.mrb[12].mxu1 }
 0x145   : > { %v3506_v14 = vpop.f32.mrb[13].mxu1 }
 0x146   : > { %v1333_v16 = vadd.f32 %v3470_v63, %v3218_v15  ;;  %v3507_v17 = vadd.f32 %v3506_v14, %v3505_v12  ;;  %v3508_v18 = vpop.f32.mrb[14].mxu1 }
 0x147   : > { %v3509_v21 = vpop.f32.mrb[15].mxu1 }
 0x148   : > { %v1395_v24 = vadd.f32 %v3507_v17, %v1330_v9  ;;  %v3510_v25 = vadd.f32 %v3509_v21, %v3508_v18  ;;  %v3527_v26 = vpop.f32.mrb[16].mxu0 }
 0x149   : > { %v3528_v59 = vpop.f32.mrb[17].mxu0 }
 0x14a   : > { %v1398_v32 = vadd.f32 %v3510_v25, %v1333_v16  ;;  %v3529_v30 = vadd.f32 %v3528_v59, %v3527_v26  ;;  %v3530_v27 = vpop.f32.mrb[18].mxu0 }
 0x14b   : > { %v3531_v28 = vpop.f32.mrb[19].mxu0 }
 0x14c   : > { %v3567_v4 = vpop.f32.mrb[16].mxu1  ;;  %v1436_v61 = vadd.f32 %v3529_v30, %v1371_v40  ;;  %v3532_v51 = vadd.f32 %v3531_v28, %v3530_v27  ;;  %v4645_v30 = vld [vmem:[#allocation2] sm:$0xf] }
 0x14d   : > { %v3568_v33 = vpop.f32.mrb[17].mxu1 }
 0x14e   : > { %v3569_v29 = vadd.f32 %v3568_v33, %v3567_v4  ;;  %v3570_v37 = vpop.f32.mrb[18].mxu1  ;;  %v1439_v38 = vadd.f32 %v3532_v51, %v1374_v5 }
 0x14f   : > { %v3571_v39 = vpop.f32.mrb[19].mxu1 }
 0x150   : > { %v3572_v15 = vadd.f32 %v3571_v39, %v3570_v37  ;;  %v1501_v19 = vadd.f32 %v3569_v29, %v1436_v61  ;;  %v3533_v41 = vpop.f32.mrb[20].mxu0  ;;  %v1815_v39 = vshll.u32 %v4645_v30, 16 }
 0x151   : > { %v3534_v42 = vpop.f32.mrb[21].mxu0 }
 0x152   : > { %v4639_v20 = vadd.f32 %v3572_v15, %v1439_v38  ;;  %v3535_v56 = vadd.f32 %v3534_v42, %v3533_v41  ;;  %v3536_v1 = vpop.f32.mrb[22].mxu0  ;;  %v4650_v38 = vld [vmem:[#allocation2 + $0x4] sm:$0x1] }
 0x153   : > { %v3537_v44 = vpop.f32.mrb[23].mxu0 }
 0x154   : > { %v3573_v43 = vpop.f32.mrb[20].mxu1  ;;  %v1444_v6 = vadd.f32 %v3535_v56, %v1379_v58  ;;  %v3538_v52 = vadd.f32 %v3537_v44, %v3536_v1  ;;  %v1944_v44 = vrot.slane %v4650_v38, 5 }
 0x155   : > { %v3574_v2 = vpop.f32.mrb[21].mxu1 }
 0x156   : > { %v3575_v40 = vadd.f32 %v3574_v2, %v3573_v43  ;;  %v3576_v0 = vpop.f32.mrb[22].mxu1  ;;  %v1447_v53 = vadd.f32 %v3538_v52, %v1382_v23 }
 0x157   : > { %v3577_v54 = vpop.f32.mrb[23].mxu1 }
 0x158   : > { %v3578_v11 = vadd.f32 %v3577_v54, %v3576_v0  ;;  %v1509_v5 = vadd.f32 %v3575_v40, %v1444_v6  ;;  %v3539_v3 = vpop.f32.mrb[24].mxu0  ;;  %v4658_v40 = vrot.slane %v1815_v39, 5  ;;  %v1821_v0 = vshll.u32 %v4650_v38, 16  ;;  %v1758_v54 = vld [vmem:[#allocation2 + $0x1c] sm:$0x1] }
 0x159   : > { %v3540_v7 = vpop.f32.mrb[25].mxu0 }
 0x15a   : > { %v1512_v22 = vadd.f32 %v3578_v11, %v1447_v53  ;;  %v3541_v34 = vadd.f32 %v3540_v7, %v3539_v3  ;;  %v3542_v35 = vpop.f32.mrb[26].mxu0 }
 0x15b   : > { %v3543_v13 = vpop.f32.mrb[27].mxu0 }
 0x15c   : > { %v3579_v36 = vpop.f32.mrb[24].mxu1  ;;  %v1452_v45 = vadd.f32 %v3541_v34, %v1387_v49  ;;  %v3544_v8 = vadd.f32 %v3543_v13, %v3542_v35  ;;  %v1740_v35 = vld [vmem:[#allocation2 + $0x8] sm:$0xf] }
 0x15d   : > { %v3580_v60 = vpop.f32.mrb[25].mxu1  ;;  %v4015_v34 = vld [vmem:[%s5136_s3 + $0x1c8] sm:$0xff]  }
 0x15e   : > { %v3581_v46 = vadd.f32 %v3580_v60, %v3579_v36  ;;  %v3582_v58 = vpop.f32.mrb[26].mxu1  ;;  %v1455_v47 = vadd.f32 %v3544_v8, %v1390_v10 }
 0x15f   : > { %v3583_v48 = vpop.f32.mrb[27].mxu1 }
 0x160   : > { %v3584_v50 = vadd.f32 %v3583_v48, %v3582_v58  ;;  %v4641_v57 = vadd.f32 %v3581_v46, %v1452_v45  ;;  %v3545_v23 = vpop.f32.mrb[28].mxu0  ;;  %v1746_v58 = vld [vmem:[#allocation2 + $0xc] sm:$0x1] }
 0x161   : > { %v3546_v31 = vpop.f32.mrb[29].mxu0 }
 0x162   : > { %v4643_v62 = vadd.f32 %v3584_v50, %v1455_v47  ;;  %v3547_v63 = vadd.f32 %v3546_v31, %v3545_v23  ;;  %v3548_v9 = vpop.f32.mrb[30].mxu0 }
 0x163   : > { %v3549_v14 = vpop.f32.mrb[31].mxu0 }
 0x164   : > { %v3585_v12 = vpop.f32.mrb[28].mxu1  ;;  %v1460_v16 = vadd.f32 %v3547_v63, %v1395_v24  ;;  %v3550_v17 = vadd.f32 %v3549_v14, %v3548_v9  ;;  %v1812_v24 = vshrl.u32 %v4645_v30, 16 }
 0x165   : > { %v3586_v49 = vpop.f32.mrb[29].mxu1 }
 0x166   : > { %v3587_v18 = vadd.f32 %v3586_v49, %v3585_v12  ;;  %v3588_v21 = vpop.f32.mrb[30].mxu1  ;;  %v1463_v25 = vadd.f32 %v3550_v17, %v1398_v32  ;;  %v4656_v6 = vrot.slane %v1812_v24, 4  ;;  %v1761_v12 = vld [vmem:[#allocation2 + $0x20] sm:$0xf] }
 0x167   : > { %v3589_v26 = vpop.f32.mrb[31].mxu1 }
 0x168   : > { %v3590_v10 = vadd.f32 %v3589_v26, %v3588_v21  ;;  %v1525_v59 = vadd.f32 %v3587_v18, %v1460_v16  ;;  %v3821_v27 = vpop.f32.mrb[32].mxu0  ;;  %v1764_v18 = vld [vmem:[#allocation2 + $0x24] sm:$0x1] }
 0x169   : > { %v1574_v4 = vadd.f32 %v3821_v27, %v1509_v5  ;;  %v1565_v28 = vpop.f32.mrb[33].mxu0  ;;  %v1749_v27 = vld [vmem:[#allocation2 + $0x10] sm:$0xf] }
 0x16a   : > { %v4647_v61 = vadd.f32 %v3590_v10, %v1463_v25  ;;  %v1566_v51 = vadd.f32 %v1565_v28, %v1501_v19  ;;  %v3822_v33 = vpop.f32.mrb[34].mxu0  ;;  %v3299_v19 = vrot.slane %v4645_v30, 9 }
 0x16b   : > { %v1598_v29 = vmax.f32 %v1574_v4, 0.0  ;;  %v1577_v37 = vadd.f32 %v3822_v33, %v1512_v22  ;;  %v1568_v32 = vpop.f32.mrb[35].mxu0  ;;  %v1752_v4 = vld [vmem:[#allocation2 + $0x14] sm:$0x1] }
 0x16c   : > { %v1596_v15 = vmax.f32 %v1566_v51, 0.0  ;;  %v1569_v41 = vadd.f32 %v1568_v32, %v4639_v20  ;;  %v1755_v20 = vld [vmem:[#allocation2 + $0x18] sm:$0xf] }
 0x16d   : > { %v3424_v42 = vpack.c.bf16 %v1598_v29, %v1598_v29  ;;  %v1599_v56 = vmax.f32 %v1577_v37, 0.0 }
 0x16e   : > { %v3422_v1 = vpack.c.bf16 %v1596_v15, %v1596_v15  ;;  %v1597_v43 = vmax.f32 %v1569_v41, 0.0 }
 0x16f   : > { %v1673_v52 = vshrl.u32 %v3424_v42, 16  ;;  %v3425_v2 = vpack.c.bf16 %v1599_v56, %v1599_v56  ;;  %v1676_v53 = vshll.u32 %v3424_v42, 16 }
 0x170   : > { %v1657_v11 = vshrl.u32 %v3422_v1, 16  ;;  %v1660_v5 = vshll.u32 %v3422_v1, 16  ;;  %v3423_v3 = vpack.c.bf16 %v1597_v43, %v1597_v43  ;;  %v3825_v7 = vpop.f32.mrb[36].mxu0 }
 0x171   : > { %v1675_v22 = vrot.slane %v1673_v52, 7  ;;  %v1681_v36 = vshrl.u32 %v3425_v2, 16  ;;  %v1684_v13 = vshll.u32 %v3425_v2, 16  ;;  %v1590_v45 = vadd.f32 %v3825_v7, %v1525_v59  ;;  %v1581_v8 = vpop.f32.mrb[37].mxu0  ;;  %v1779_v2 = vld [vmem:[#allocation2 + $0x38] sm:$0xf] }
 0x172   : > { %v1659_v46 = vrot.slane %v1657_v11, 7  ;;  %v1665_v47 = vshrl.u32 %v3423_v3, 16  ;;  %v1668_v48 = vshll.u32 %v3423_v3, 16  ;;  %v1582_v50 = vadd.f32 %v1581_v8, %v4641_v57  ;;  %v3826_v23 = vpop.f32.mrb[38].mxu0  ;;  %v1767_v7 = vld [vmem:[#allocation2 + $0x28] sm:$0xf] }
 0x173   : > { %v1678_v31 = vor.u32 %v1676_v53, %v1675_v22  ;;  %v1679_v63 = vrot.slane %v1675_v22, 4  ;;  %v1683_v9 = vrot.slane %v1681_v36, 7  ;;  %v1602_v14 = vmax.f32 %v1590_v45, 0.0  ;;  %v1584_v16 = vpop.f32.mrb[39].mxu0  ;;  %v1770_v22 = vld [vmem:[#allocation2 + $0x2c] sm:$0x1] }
 0x174   : > { %v1662_v17 = vor.u32 %v1660_v5, %v1659_v46  ;;  %v1663_v49 = vrot.slane %v1659_v46, 4  ;;  %v1667_v21 = vrot.slane %v1665_v47, 7  ;;  %v1600_v25 = vmax.f32 %v1582_v50, 0.0 }
 0x175   : > { %v1756_v26 = vsel %vm4663_vm9, %v1678_v31, %v1755_v20  ;;  %v1759_v10 = vsel %vm4669_vm10, %v1679_v63, %v1758_v54  ;;  %v1686_v59 = vor.u32 %v1684_v13, %v1683_v9  ;;  %v1687_v57 = vrot.slane %v1683_v9, 4  ;;  %v1788_v63 = vld [vmem:[#allocation2 + $0x44] sm:$0x1]  ;;  %v1773_v9 = vld [vmem:[#allocation2 + $0x30] sm:$0xf] }
 0x176   : > { %1757 = vst [vmem:[#allocation2 + $0x18] sm:$0xf] %v1756_v26  ;;  %1760 = vst [vmem:[#allocation2 + $0x1c] sm:$0x1] %v1759_v10  ;;  %v1741_v28 = vsel %vm4663_vm9, %v1662_v17, %v1740_v35  ;;  %v1747_v51 = vsel %vm4669_vm10, %v1663_v49, %v1746_v58  ;;  %v1670_v33 = vor.u32 %v1668_v48, %v1667_v21  ;;  %v1671_v24 = vrot.slane %v1667_v21, 4 }
 0x177   : > { %1742 = vst [vmem:[#allocation2 + $0x8] sm:$0xf] %v1741_v28  ;;  %1748 = vst [vmem:[#allocation2 + $0xc] sm:$0x1] %v1747_v51  ;;  %v1762_v29 = vsel %vm4663_vm9, %v1686_v59, %v1761_v12  ;;  %v1765_v37 = vsel %vm4669_vm10, %v1687_v57, %v1764_v18  ;;  %v3428_v32 = vpack.c.bf16 %v1602_v14, %v1602_v14  ;;  %v4710_v45 = vrot.slane %v1821_v0, 5 }
 0x178   : > { %v3426_v39 = vpack.c.bf16 %v1600_v25, %v1600_v25  ;;  %1763 = vst [vmem:[#allocation2 + $0x20] sm:$0xf] %v1762_v29  ;;  %1766 = vst [vmem:[#allocation2 + $0x24] sm:$0x1] %v1765_v37  ;;  %v1750_v41 = vsel %vm4663_vm9, %v1670_v33, %v1749_v27  ;;  %v1753_v42 = vsel %vm4669_vm10, %v1671_v24, %v1752_v4  ;;  %v1785_v0 = vld [vmem:[#allocation2 + $0x40] sm:$0xf] }
 0x179   : > { %v1593_v56 = vadd.f32 %v3826_v23, %v4647_v61  ;;  %v1585_v1 = vadd.f32 %v1584_v16, %v4643_v62  ;;  %1751 = vst [vmem:[#allocation2 + $0x10] sm:$0xf] %v1750_v41  ;;  %1754 = vst [vmem:[#allocation2 + $0x14] sm:$0x1] %v1753_v42  ;;  %v1705_v43 = vshrl.u32 %v3428_v32, 16  ;;  %v4704_v54 = vsel %vm4688_vm11, %v3299_v19, %v1944_v44 }
 0x17a   : > { %v1689_v52 = vshrl.u32 %v3426_v39, 16  ;;  %v1708_v5 = vshll.u32 %v3428_v32, 16  ;;  %v1782_v61 = vld [vmem:[#allocation2 + $0x3c] sm:$0x1]  ;;  %v1692_v62 = vshll.u32 %v3426_v39, 16  ;;  %v1818_v13 = vor.u32 %v4658_v40, %v4656_v6 }
 0x17b   : > { %v1603_v53 = vmax.f32 %v1593_v56, 0.0  ;;  %v1601_v20 = vmax.f32 %v1585_v1, 0.0  ;;  %v1707_v11 = vrot.slane %v1705_v43, 7  ;;  %v1776_v21 = vld [vmem:[#allocation2 + $0x34] sm:$0x1]  ;;  %v4012_v1 = vld [vmem:[%s5136_s3 + $0x180] sm:$0xff]  }
 0x17c   : > { %v1691_v3 = vrot.slane %v1689_v52, 7  ;;  %v1819_v26 = vrot.slane %v1818_v13, 4 }
 0x17d   : > { %v3429_v35 = vpack.c.bf16 %v1603_v53, %v1603_v53  ;;  %v3427_v36 = vpack.c.bf16 %v1601_v20, %v1601_v20  ;;  %v1710_v8 = vor.u32 %v1708_v5, %v1707_v11  ;;  %v1711_v46 = vrot.slane %v1707_v11, 4  ;;  %v4735_v24 = vld [vmem:[#allocation2 + $0x18] sm:$0xf]  ;;  %v1798_v20 = vld [vmem:[#allocation2 + $0x1c] sm:$0x1] }
 0x17e   : > { %v1694_v19 = vor.u32 %v1692_v62, %v1691_v3  ;;  %v1695_v44 = vrot.slane %v1691_v3, 4  ;;  %v4712_v23 = vld [vmem:[#allocation2 + $0x8] sm:$0xf]  ;;  %v1794_v12 = vld [vmem:[#allocation2 + $0xc] sm:$0x1]  ;;  %v1824_v60 = vsel %vm4314_vm2, %v1819_v26, %v4710_v45 }
 0x17f   : > { %v1713_v58 = vshrl.u32 %v3429_v35, 16  ;;  %v1716_v47 = vshll.u32 %v3429_v35, 16  ;;  %v1697_v48 = vshrl.u32 %v3427_v36, 16  ;;  %v1700_v50 = vshll.u32 %v3427_v36, 16  ;;  %v4729_v51 = vld [vmem:[#allocation2 + $0x20] sm:$0xf] }
 0x180   : > { %v1780_v31 = vsel %vm4663_vm9, %v1710_v8, %v1779_v2  ;;  %v1783_v6 = vsel %vm4669_vm10, %v1711_v46, %v1782_v61  ;;  %v1768_v38 = vsel %vm4663_vm9, %v1694_v19, %v1767_v7  ;;  %v1771_v40 = vsel %vm4669_vm10, %v1695_v44, %v1770_v22  ;;  %v4722_v17 = vld [vmem:[#allocation2 + $0x10] sm:$0xf]  ;;  %v1796_v43 = vld [vmem:[#allocation2 + $0x14] sm:$0x1]  ;;  %v4016_v35 = vld [vmem:[%s5136_s3 + $0x188] sm:$0xff]  }
 0x181   : > { %1781 = vst [vmem:[#allocation2 + $0x38] sm:$0xf] %v1780_v31  ;;  %1784 = vst [vmem:[#allocation2 + $0x3c] sm:$0x1] %v1783_v6  ;;  %v1715_v14 = vrot.slane %v1713_v58, 7  ;;  %v1699_v16 = vrot.slane %v1697_v48, 7  ;;  %v3321_v25 = vcombine.low %v4712_v23, %v4722_v17  ;;  %v3322_v2 = vcombine.low %v4735_v24, %v4729_v51 }
 0x182   : > { %1769 = vst [vmem:[#allocation2 + $0x28] sm:$0xf] %v1768_v38  ;;  %1772 = vst [vmem:[#allocation2 + $0x2c] sm:$0x1] %v1771_v40  ;;  %v3300_v49 = vrot.slane %v4712_v23, 9  ;;  %v1948_v18 = vrot.slane %v1794_v12, 5  ;;  %v3309_v19 = vcombine.low %v4645_v30, %v4712_v23 }
 0x183   : > { %v1826_v10 = vshrl.u32 %v4712_v23, 16  ;;  %v1829_v59 = vshll.u32 %v4712_v23, 16  ;;  %v1718_v57 = vor.u32 %v1716_v47, %v1715_v14  ;;  %v1719_v27 = vrot.slane %v1715_v14, 4  ;;  %2842 = vmatprep.mubr.bf16.mxu0 %v3321_v25  ;;  %v4020_v47 = vld [vmem:[%s5136_s3 + $0x1d0] sm:$0xff]   ;;  %v4019_v38 = vld [vmem:[%s5136_s3 + $0x100] sm:$0xff]   ;;  %v4023_v30 = vld [vmem:[%s5136_s3 + $0x148] sm:$0xff]  }
 0x184   : > { %v1702_v4 = vor.u32 %v1700_v50, %v1699_v16  ;;  %v1703_v28 = vrot.slane %v1699_v16, 4  ;;  %v4733_v33 = vsel %vm4688_vm11, %v3300_v49, %v1948_v18  ;;  %v1835_v32 = vshll.u32 %v1794_v12, 16  ;;  %v4783_v23 = vld [vmem:[#allocation2 + $0x24] sm:$0x1]  ;;  %v4022_v25 = vld [vmem:[%s5136_s3 + $0x190] sm:$0xff]  }
 0x185   : > { %v1828_v29 = vrot.slane %v1826_v10, 4  ;;  %v1831_v37 = vrot.slane %v1829_v59, 5  ;;  %v1786_v39 = vsel %vm4663_vm9, %v1718_v57, %v1785_v0  ;;  %v1789_v41 = vsel %vm4669_vm10, %v1719_v27, %v1788_v63  ;;  %v4025_v57 = vld [vmem:[%s5136_s3 + $0x1d8] sm:$0xff]  }
 0x186   : > { %v1774_v42 = vsel %vm4663_vm9, %v1702_v4, %v1773_v9  ;;  %v1777_v56 = vsel %vm4669_vm10, %v1703_v28, %v1776_v21  ;;  %1787 = vst [vmem:[#allocation2 + $0x40] sm:$0xf] %v1786_v39  ;;  %1790 = vst [vmem:[#allocation2 + $0x44] sm:$0x1] %v1789_v41  ;;  %v3317_v52 = vcombine.low %v4704_v54, %v4733_v33  ;;  %v1837_v11 = vrot.slane %v1835_v32, 5 }
 0x187   : > { %1775 = vst [vmem:[#allocation2 + $0x30] sm:$0xf] %v1774_v42  ;;  %1778 = vst [vmem:[#allocation2 + $0x34] sm:$0x1] %v1777_v56  ;;  %v1832_v53 = vor.u32 %v1831_v37, %v1828_v29  ;;  %v1840_v5 = vshrl.u32 %v4722_v17, 16  ;;  %v1843_v61 = vshll.u32 %v4722_v17, 16 }
 0x188   : > { %v1854_v54 = vshrl.u32 %v4735_v24, 16  ;;  %2843 = vmatmul.mubr.bf16.vlgmr.msra.gmra.mrb[40].mxu0 %v3317_v52  ;;  %v1849_v62 = vshll.u32 %v1796_v43, 16  ;;  %v1857_v7 = vshll.u32 %v4735_v24, 16  ;;  %v3301_v22 = vrot.slane %v4722_v17, 9  ;;  %v4024_v37 = vld [vmem:[%s5136_s3 + $0x108] sm:$0xff]   ;;  %v4028_v42 = vld [vmem:[%s5136_s3 + $0x150] sm:$0xff]  }
 0x189   : > { %v1833_v3 = vrot.slane %v1832_v53, 4  ;;  %2850 = vmatprep.mubr.bf16.mxu0 %v3322_v2  ;;  %3724 = vmatpush3.bf16.msra.mxu0 %v4012_v1  ;;  %v1842_v36 = vrot.slane %v1840_v5, 4  ;;  %v1845_v13 = vrot.slane %v1843_v61, 5  ;;  %v1863_v8 = vshll.u32 %v1798_v20, 16  ;;  %v4789_v9 = vld [vmem:[#allocation2 + $0x28] sm:$0xf] }
 0x18a   : > { %v1856_v45 = vrot.slane %v1854_v54, 4  ;;  %3725 = vmatprep.subr.bf16.mxu0 %v4015_v34  ;;  %v1859_v44 = vrot.slane %v1857_v7, 5  ;;  %v1952_v58 = vrot.slane %v1796_v43, 5  ;;  %v3302_v31 = vrot.slane %v4735_v24, 9  ;;  %v1802_v12 = vld [vmem:[#allocation2 + $0x2c] sm:$0x1] }
 0x18b   : > { %v4768_v46 = vsel %vm4314_vm2, %v1833_v3, %v1837_v11  ;;  %v1846_v50 = vor.u32 %v1845_v13, %v1842_v36  ;;  %v1956_v6 = vrot.slane %v1798_v20, 5  ;;  %v1851_v40 = vrot.slane %v1849_v62, 5  ;;  %v4026_v52 = vld [vmem:[%s5136_s3 + $0x198] sm:$0xff]   ;;  %v4030_v61 = vld [vmem:[%s5136_s3 + $0x1e0] sm:$0xff]  }
 0x18c   : > { %v3313_v48 = vcombine.low %v1824_v60, %v4768_v46  ;;  %v1860_v0 = vor.u32 %v1859_v44, %v1856_v45  ;;  %v4787_v63 = vsel %vm4688_vm11, %v3301_v22, %v1952_v58  ;;  %v1868_v14 = vshrl.u32 %v4729_v51, 16  ;;  %v4837_v53 = vld [vmem:[#allocation2 + $0x38] sm:$0xf] }
 0x18d   : > { %3726 = vmatpush3.bf16.msra.mxu0 %v4016_v35  ;;  %v1847_v16 = vrot.slane %v1846_v50, 4  ;;  %v1865_v49 = vrot.slane %v1863_v8, 5  ;;  %v4794_v18 = vsel %vm4688_vm11, %v3302_v31, %v1956_v6  ;;  %v1871_v26 = vshll.u32 %v4729_v51, 16  ;;  %v4844_v54 = vld [vmem:[#allocation2 + $0x40] sm:$0xf]  ;;  %v4029_v35 = vld [vmem:[%s5136_s3 + $0x110] sm:$0xff]  }
 0x18e   : > { %2777 = vmatprep.mubr.bf16.mxu1 %v3313_v48  ;;  %v4796_v21 = vld [vmem:[#allocation2 + $0x30] sm:$0xf]  ;;  %v1861_v10 = vrot.slane %v1860_v0, 4  ;;  %v4804_v59 = vcombine.low %v4787_v63, %v4794_v18  ;;  %3727 = vmatprep.subr.bf16.mxu0 %v4020_v47  ;;  %v1870_v27 = vrot.slane %v1868_v14, 4  ;;  %v1877_v4 = vshll.u32 %v4783_v23, 16  ;;  %v4033_v45 = vld [vmem:[%s5136_s3 + $0x158] sm:$0xff]  }
 0x18f   : > { %2778 = vmatmul.mubr.bf16.vlgmr.msra.gmra.mrb[32].mxu1 %v3309_v19  ;;  %v4812_v28 = vsel %vm4314_vm2, %v1847_v16, %v1851_v40  ;;  %v3323_v29 = vcombine.low %v4789_v9, %v4796_v21  ;;  %v1873_v32 = vrot.slane %v1871_v26, 5  ;;  %v1882_v39 = vshrl.u32 %v4789_v9, 16  ;;  %v1804_v8 = vld [vmem:[#allocation2 + $0x34] sm:$0x1]  ;;  %v4032_v47 = vld [vmem:[%s5136_s3 + $0x1a0] sm:$0xff]   ;;  %v4035_v6 = vld [vmem:[%s5136_s3 + $0x1e8] sm:$0xff]  }
 0x190   : > { %3684 = vmatpush3.bf16.msra.mxu1 %v4019_v38  ;;  %v4822_v41 = vsel %vm4314_vm2, %v1861_v10, %v1865_v49  ;;  %2851 = vmatmul.mubr.bf16.gmra.mrb[44].mxu0 %v4804_v59  ;;  %v1885_v56 = vshll.u32 %v4789_v9, 16  ;;  %v1891_v1 = vshll.u32 %v1802_v12, 16  ;;  %v3303_v60 = vrot.slane %v4729_v51, 9  ;;  %v1806_v38 = vld [vmem:[#allocation2 + $0x3c] sm:$0x1] }
 0x191   : > { %3685 = vmatprep.subr.bf16.mxu1 %v4023_v30  ;;  %v4831_v43 = vcombine.low %v4812_v28, %v4822_v41  ;;  %2858 = vmatprep.mubr.bf16.mxu0 %v3323_v29  ;;  %v1874_v2 = vor.u32 %v1873_v32, %v1870_v27  ;;  %v1884_v34 = vrot.slane %v1882_v39, 4  ;;  %v1960_v11 = vrot.slane %v4783_v23, 5  ;;  %v4034_v0 = vld [vmem:[%s5136_s3 + $0x118] sm:$0xff]  }
 0x192   : > { %3728 = vmatpush3.bf16.msra.mxu0 %v4022_v25  ;;  %v1887_v20 = vrot.slane %v1885_v56, 5  ;;  %v3304_v5 = vrot.slane %v4789_v9, 9  ;;  %v4849_v3 = vcombine.low %v4722_v17, %v4735_v24  ;;  %v1879_v7 = vrot.slane %v1877_v4, 5  ;;  %v4038_v25 = vld [vmem:[%s5136_s3 + $0x160] sm:$0xff]   ;;  %v4036_v4 = vld [vmem:[%s5136_s3 + $0x1a8] sm:$0xff]   ;;  %v4040_v56 = vld [vmem:[%s5136_s3 + $0x1f0] sm:$0xff]  }
 0x193   : > { %3729 = vmatprep.subr.bf16.mxu0 %v4025_v57  ;;  %2785 = vmatprep.mubr.bf16.mxu1 %v4831_v43  ;;  %v1875_v62 = vrot.slane %v1874_v2, 4  ;;  %v1964_v22 = vrot.slane %v1802_v12, 5  ;;  %v1893_v13 = vrot.slane %v1891_v1, 5  ;;  %v1896_v19 = vshrl.u32 %v4796_v21, 16 }
 0x194   : > { %3686 = vmatpush3.bf16.msra.mxu1 %v4024_v37  ;;  %v1888_v36 = vor.u32 %v1887_v20, %v1884_v34  ;;  %v1899_v17 = vshll.u32 %v4796_v21, 16  ;;  %v4861_v24 = vsel %vm4688_vm11, %v3303_v60, %v1960_v11  ;;  %v3324_v58 = vcombine.low %v4837_v53, %v4844_v54  ;;  %v4039_v34 = vld [vmem:[%s5136_s3 + $0x120] sm:$0xff]   ;;  %v4042_v20 = vld [vmem:[%s5136_s3 + $0x168] sm:$0xff]  }
 0x195   : > { %3687 = vmatprep.subr.bf16.mxu1 %v4028_v42  ;;  %v4865_v44 = vsel %vm4688_vm11, %v3304_v5, %v1964_v22  ;;  %v1910_v48 = vshrl.u32 %v4837_v53, 16  ;;  %v1898_v30 = vrot.slane %v1896_v19, 4  ;;  %v4883_v40 = vsel %vm4314_vm2, %v1875_v62, %v1879_v7  ;;  %v4044_v7 = vld [vmem:[%s5136_s3 + $0x1f8] sm:$0xff]   ;;  %v4048_v19 = vld [vmem:[%s5136_s3 + $0x130] sm:$0xff]  }
 0x196   : > { %3730 = vmatpush3.bf16.msra.mxu0 %v4026_v52  ;;  %v1889_v50 = vrot.slane %v1888_v36, 4  ;;  %v4876_v31 = vcombine.low %v4861_v24, %v4865_v44  ;;  %v1901_v23 = vrot.slane %v1899_v17, 5  ;;  %v1905_v12 = vshll.u32 %v1804_v8, 16 }
 0x197   : > { %2786 = vmatmul.mubr.bf16.gmra.mrb[36].mxu1 %v4849_v3  ;;  %3731 = vmatprep.subr.bf16.mxu0 %v4030_v61  ;;  %v1912_v14 = vrot.slane %v1910_v48, 4  ;;  %v1913_v16 = vshll.u32 %v4837_v53, 16  ;;  %v3305_v10 = vrot.slane %v4796_v21, 9  ;;  %v1968_v57 = vrot.slane %v1804_v8, 5  ;;  %v4045_v8 = vld [vmem:[%s5136_s3 + $0x1b8] sm:$0xff]  }
 0x198   : > { %3688 = vmatpush3.bf16.msra.mxu1 %v4029_v35  ;;  %v4891_v49 = vsel %vm4314_vm2, %v1889_v50, %v1893_v13  ;;  %2859 = vmatmul.mubr.bf16.gmra.mrb[48].mxu0 %v4876_v31  ;;  %v1902_v26 = vor.u32 %v1901_v23, %v1898_v30  ;;  %v1919_v37 = vshll.u32 %v1806_v38, 16  ;;  %v3306_v32 = vrot.slane %v4837_v53, 9  ;;  %v4043_v35 = vld [vmem:[%s5136_s3 + $0x128] sm:$0xff]   ;;  %v4047_v13 = vld [vmem:[%s5136_s3 + $0x170] sm:$0xff]  }
 0x199   : > { %3689 = vmatprep.subr.bf16.mxu1 %v4033_v45  ;;  %v4900_v27 = vcombine.low %v4883_v40, %v4891_v49  ;;  %2866 = vmatprep.mubr.bf16.mxu0 %v3324_v58  ;;  %v1915_v29 = vrot.slane %v1913_v16, 5  ;;  %v1972_v42 = vrot.slane %v1806_v38, 5  ;;  %v1907_v1 = vrot.slane %v1905_v12, 5  ;;  %v4956_v45 = vld [vmem:[#allocation2 + $0x48] sm:$0xf] }
 0x19a   : > { %3732 = vmatpush3.bf16.msra.mxu0 %v4032_v47  ;;  %v1903_v39 = vrot.slane %v1902_v26, 4  ;;  %v4912_v2 = vsel %vm4688_vm11, %v3305_v10, %v1968_v57  ;;  %v4919_v60 = vcombine.low %v4729_v51, %v4789_v9  ;;  %v1921_v61 = vrot.slane %v1919_v37, 5  ;;  %v4041_v51 = vld [vmem:[%s5136_s3 + $0x1b0] sm:$0xff]   ;;  %v4987_v12 = vld [vmem:[#allocation2 + $0x4c] sm:$0x1] }
 0x19b   : > { %3733 = vmatprep.subr.bf16.mxu0 %v4035_v6  ;;  %2793 = vmatprep.mubr.bf16.mxu1 %v4900_v27  ;;  %v1916_v52 = vor.u32 %v1915_v29, %v1912_v14  ;;  %v4930_v62 = vsel %vm4688_vm11, %v3306_v32, %v1972_v42  ;;  %v1995_v17 = vshrl.u32 %v4956_v45, 16  ;;  %v3312_v58 = vcombine.low %v4796_v21, %v4837_v53  ;;  %v4050_v21 = vld [vmem:[%s5136_s3 + $0x138] sm:$0xff]   ;;  %v4051_v53 = vld [vmem:[%s5136_s3 + $0x240] sm:$0xff]   ;;  %v4053_v14 = vld [vmem:[%s5136_s3 + $0x248] sm:$0xff]  }
 0x19c   : > { %3690 = vmatpush3.bf16.msra.mxu1 %v4034_v0  ;;  %v4926_v11 = vsel %vm4314_vm2, %v1903_v39, %v1907_v1  ;;  %v4938_v9 = vcombine.low %v4912_v2, %v4930_v62  ;;  %v1975_v47 = vshrl.u32 %v4844_v54, 16  ;;  %v1978_v48 = vshll.u32 %v4844_v54, 16  ;;  %v4057_v42 = vld [vmem:[%s5136_s3 + $0x258] sm:$0xff]  }
 0x19d   : > { %3691 = vmatprep.subr.bf16.mxu1 %v4038_v25  ;;  %v1917_v5 = vrot.slane %v1916_v52, 4  ;;  %v1998_v50 = vshll.u32 %v4956_v45, 16  ;;  %v3329_v6 = vcombine.low %v4733_v33, %v4787_v63  ;;  %v1997_v23 = vrot.slane %v1995_v17, 4  ;;  %v4052_v33 = vld [vmem:[%s5136_s3 + $0x200] sm:$0xff]  }
 0x19e   : > { %3734 = vmatpush3.bf16.msra.mxu0 %v4036_v4  ;;  %v1977_v38 = vrot.slane %v1975_v47, 4  ;;  %v1980_v30 = vrot.slane %v1978_v48, 5  ;;  %v1808_v63 = vld [vmem:[#allocation2 + $0x44] sm:$0x1]  ;;  %v2004_v26 = vshll.u32 %v4987_v12, 16  ;;  %v3330_v10 = vcombine.low %v4794_v18, %v4861_v24  ;;  %v4056_v24 = vld [vmem:[%s5136_s3 + $0x210] sm:$0xff]  }
 0x19f   : > { %2794 = vmatmul.mubr.bf16.gmra.mrb[40].mxu1 %v4919_v60  ;;  %3735 = vmatprep.subr.bf16.mxu0 %v4040_v56  ;;  %v4945_v22 = vsel %vm4314_vm2, %v1917_v5, %v1921_v61  ;;  %v2000_v0 = vrot.slane %v1998_v50, 5  ;;  %v1984_v57 = vshll.u32 %v1808_v63, 16  ;;  %v3326_v37 = vcombine.low %v4822_v41, %v4883_v40  ;;  %v4058_v40 = vld [vmem:[%s5136_s3 + $0x218] sm:$0xff]   ;;  %v4063_v61 = vld [vmem:[%s5136_s3 + $0x228] sm:$0xff]  }
 0x1a0   : > { %3692 = vmatpush3.bf16.msra.mxu1 %v4039_v34  ;;  %v3316_v36 = vcombine.low %v4926_v11, %v4945_v22  ;;  %2867 = vmatmul.mubr.bf16.gmra.mrb[52].mxu0 %v4938_v9  ;;  %v1981_v16 = vor.u32 %v1980_v30, %v1977_v38  ;;  %v2006_v29 = vrot.slane %v2004_v26, 5  ;;  %v3331_v56 = vcombine.low %v4865_v44, %v4912_v2  ;;  %v4061_v2 = vld [vmem:[%s5136_s3 + $0x220] sm:$0xff]  }
 0x1a1   : > { %3693 = vmatprep.subr.bf16.mxu1 %v4042_v20  ;;  %2972 = vmatprep.mubr.bf16.mxu0 %v4831_v43  ;;  %v4049_v43 = vld [vmem:[%s5136_s3 + $0x178] sm:$0xff]   ;;  %v2001_v25 = vor.u32 %v2000_v0, %v1997_v23  ;;  %v1986_v18 = vrot.slane %v1984_v57, 5  ;;  %v3307_v1 = vrot.slane %v4844_v54, 9  ;;  %v1992_v52 = vrot.slane %v1808_v63, 5 }
 0x1a2   : > { %3736 = vmatpush3.bf16.msra.mxu0 %v4041_v51  ;;  %2801 = vmatprep.mubr.bf16.mxu1 %v3316_v36  ;;  %v3327_v34 = vcombine.low %v4891_v49, %v4926_v11  ;;  %v3333_v5 = vcombine.low %v4844_v54, %v4956_v45  ;;  %v4064_v49 = vld [vmem:[%s5136_s3 + $0x270] sm:$0xff]   ;;  %v4067_v51 = vld [vmem:[%s5136_s3 + $0x238] sm:$0xff]  }
 0x1a3   : > { %3737 = vmatprep.subr.bf16.mxu0 %v4044_v7  ;;  %v2002_v4 = vrot.slane %v2001_v25, 4  ;;  %v1993_v44 = vsel %vm4688_vm11, %v3307_v1, %v1992_v52  ;;  %v4065_v11 = vld [vmem:[%s5136_s3 + $0x230] sm:$0xff]   ;;  %v4068_v7 = vld [vmem:[%s4293_s9 + $0xd8] ss:$8 sps:$4 sm:$0xff]  }
 0x1a4   : > { %3694 = vmatpush3.bf16.msra.mxu1 %v4043_v35  ;;  %v3332_v20 = vcombine.low %v4930_v62, %v1993_v44  ;;  %v4066_v62 = vld [vmem:[%s5136_s3 + $0x278] sm:$0xff]   ;;  %v4069_v35 = vld [vmem:[%s4293_s9 + $0xe8] ss:$8 sps:$4 sm:$0xff]  }
 0x1a5   : > { %3695 = vmatprep.subr.bf16.mxu1 %v4047_v13  ;;  %v2007_v39 = vsel %vm4314_vm2, %v2002_v4, %v2006_v29  ;;  %v2012_v13 = vrot.slane %v4987_v12, 5 }
 0x1a6   : > { %3738 = vmatpush3.bf16.msra.mxu0 %v4045_v8  ;;  %v4071_v8 = vld [vmem:[%s4293_s9 + $0x108] ss:$8 sps:$4 sm:$0xff]  }
 0x1a7   : > { %2802 = vmatmul.mubr.bf16.gmra.mrb[44].mxu1 %v3312_v58 }
 0x1a8   : > { %3696 = vmatpush3.bf16.msra.mxu1 %v4048_v19  ;;  %2907 = vmatprep.mubr.bf16.mxu1 %v3329_v6 }
 0x1a9   : > { %2973 = vmatmul.mubr.bf16.vlgmr.msra.gmra.mrb[56].mxu0 %v4849_v3  ;;  %3697 = vmatprep.subr.bf16.mxu1 %v4049_v43  ;;  %v3325_v3 = vcombine.low %v4768_v46, %v4812_v28  ;;  %v4054_v46 = vld [vmem:[%s5136_s3 + $0x208] sm:$0xff]   ;;  %v4055_v28 = vld [vmem:[%s5136_s3 + $0x250] sm:$0xff]  }
 0x1aa   : > { %2980 = vmatprep.mubr.bf16.mxu0 %v4900_v27  ;;  %v1982_v27 = vrot.slane %v1981_v16, 4 }
 0x1ac   : > { %3698 = vmatpush3.bf16.msra.mxu1 %v4050_v21  ;;  %v1987_v32 = vsel %vm4314_vm2, %v1982_v27, %v1986_v18 }
 0x1ad   : > { %3763 = vmatprep.subr.bf16.mxu1 %v4051_v53  ;;  %v3334_v41 = vcombine.low %v1987_v32, %v2007_v39  ;;  %v3328_v54 = vcombine.low %v4945_v22, %v1987_v32  ;;  %v4070_v22 = vld [vmem:[%s4293_s9 + $0xf8] ss:$8 sps:$4 sm:$0xff]   ;;  %s230_s9 = sand.u32 1, %s4158_s19  }
 0x1ae   : > { %s3180_s8 = sshll.u32 %s230_s9, 6  ;;  %s5092_s16 = scalar_lea.sflag [#allocation5], %s230_s9 }
 0x1af   : > { %2908 = vmatmul.mubr.bf16.vlgmr.msra.gmra.mrb[48].mxu1 %v3325_v3  ;;  %s5071_s10 = scalar_lea.vmem [#allocation6], %s3180_s8 }
 0x1b0   : > { %2915 = vmatprep.mubr.bf16.mxu1 %v3330_v10  ;;  %3764 = vmatpush3.bf16.msra.mxu1 %v4052_v33  ;;  %s3100_s11 = sshll.u32 %s5071_s10, 4  ;;  %s5081_s11 = int_to_ptr.vmem [resolvable:$true] %s3100_s11 }
 0x1b1   : > { %2981 = vmatmul.mubr.bf16.gmra.mrb[60].mxu0 %v4919_v60  ;;  %3765 = vmatprep.subr.bf16.mxu1 %v4053_v14  ;;  %v4062_v60 = vld [vmem:[%s5136_s3 + $0x268] sm:$0xff]   ;;  %s4100_s17 = scalar_lea.vmem %s5081_s11, 1024  ;;  %p4107_p2 = scmp.lt.s32.totalorder %s5081_s11, %s4105_s23 }
 0x1b2   : > { %2988 = vmatprep.mubr.bf16.mxu0 %v3316_v36  ;;  %v3308_v36 = vrot.slane %v4956_v45, 9  ;;  %v3336_v45 = vld [vmem:[%s5137_s4] ss:$0 sm:$0xff]  ;;  %p4101_p6 = scmp.ne.s32.totalorder %s5081_s11, %s4100_s17  ;;  %p4108_p3 = scmp.lt.s32.totalorder %s4106_s25, %s4100_s17 }
 0x1b4   : > { %3766 = vmatpush3.bf16.msra.mxu1 %v4054_v46  ;;  %v2013_v19 = vsel %vm4688_vm11, %v3308_v36, %v2012_v13  ;;  %p4102_p10 = pnand %p4101_p6, %p5157_p9  ;;  %p4109_p4 = por %p4108_p3, %p4107_p2 }
 0x1b5   : > { %3767 = vmatprep.subr.bf16.mxu1 %v4055_v28  ;;  %v3335_v17 = vcombine.low %v1993_v44, %v2013_v19 }
 0x1b6   : > { %p4103_p12 = pneg %p4102_p10 }
 0x1b7   : > { %2916 = vmatmul.mubr.bf16.gmra.mrb[52].mxu1 %v3326_v37 }
 0x1b8   : > { %2923 = vmatprep.mubr.bf16.mxu1 %v3331_v56  ;;  %3768 = vmatpush3.bf16.msra.mxu1 %v4056_v24  ;;  %p4110_p7 = pnand %p4109_p4, %p4103_p12 }
 0x1b9   : > { %2989 = vmatmul.mubr.bf16.gmra.mrb[64].mxu0 %v3312_v58  ;;  %3769 = vmatprep.subr.bf16.mxu1 %v4057_v42 }
 0x1ba   : > { %2996 = vmatprep.mubr.bf16.mxu0 %v3334_v41 }
 0x1bc   : > { %3770 = vmatpush3.bf16.msra.mxu1 %v4058_v40 }
 0x1bd   : > { %3771 = vmatprep.subr.bf16.mxu1 %v4059_v55 }
 0x1bf   : > { %2924 = vmatmul.mubr.bf16.gmra.mrb[56].mxu1 %v3327_v34 }
 0x1c0   : > { %2931 = vmatprep.mubr.bf16.mxu1 %v3332_v20  ;;  %3772 = vmatpush3.bf16.msra.mxu1 %v4061_v2 }
 0x1c1   : > { %2997 = vmatmul.mubr.bf16.gmra.mrb[68].mxu0 %v3333_v5  ;;  %3773 = vmatprep.subr.bf16.mxu1 %v4062_v60 }
 0x1c4   : > { %3774 = vmatpush3.bf16.msra.mxu1 %v4063_v61 }
 0x1c5   : > { %3775 = vmatprep.subr.bf16.mxu1 %v4064_v49 }
 0x1c7   : > { %2932 = vmatmul.mubr.bf16.gmra.mrb[60].mxu1 %v3328_v54 }
 0x1c8   : > { %3776 = vmatpush3.bf16.msra.mxu1 %v4065_v11  ;;  %3037 = vmatprep.mubr.bf16.mxu1 %v4068_v7 }
 0x1c9   : > { %3777 = vmatprep.subr.bf16.mxu1 %v4066_v62 }
 0x1cc   : > { %3778 = vmatpush3.bf16.msra.mxu1 %v4067_v51 }
 0x1cf   : > { %3038 = vmatmul.mubr.bf16.vlgmr.msra.gmra.mrb[64].mxu1 %v4804_v59 }
 0x1d0   : > { %3045 = vmatprep.mubr.bf16.mxu1 %v4069_v35 }
 0x1d7   : > { %3046 = vmatmul.mubr.bf16.gmra.mrb[68].mxu1 %v4876_v31 }
 0x1d8   : > { %3053 = vmatprep.mubr.bf16.mxu1 %v4070_v22 }
 0x1df   : > { %3054 = vmatmul.mubr.bf16.gmra.mrb[72].mxu1 %v4938_v9 }
 0x1e0   : > { %3061 = vmatprep.mubr.bf16.mxu1 %v4071_v8 }
 0x1e7   : > { %3062 = vmatmul.mubr.bf16.gmra.mrb[76].mxu1 %v3335_v17 }
 0x25b   : > { %v3659_v59 = vpop.f32.mrb[40].mxu0 }
 0x25c   : > { %v3660_v58 = vpop.f32.mrb[41].mxu0 }
 0x25d   : > { %v3661_v43 = vadd.f32 %v3660_v58, %v3659_v59  ;;  %v3662_v47 = vpop.f32.mrb[42].mxu0 }
 0x25e   : > { %v3663_v31 = vpop.f32.mrb[43].mxu0 }
 0x25f   : > { %v3664_v48 = vadd.f32 %v3663_v31, %v3662_v47 }
 0x262   : > { %v3619_v50 = vpop.f32.mrb[32].mxu1 }
 0x263   : > { %v3620_v6 = vpop.f32.mrb[33].mxu1  ;;  %v3665_v21 = vpop.f32.mrb[44].mxu0 }
 0x264   : > { %v3621_v9 = vadd.f32 %v3620_v6, %v3619_v50  ;;  %v3622_v53 = vpop.f32.mrb[34].mxu1  ;;  %v3666_v38 = vpop.f32.mrb[45].mxu0 }
 0x265   : > { %v3623_v15 = vpop.f32.mrb[35].mxu1  ;;  %v3667_v23 = vadd.f32 %v3666_v38, %v3665_v21  ;;  %v3668_v33 = vpop.f32.mrb[46].mxu0 }
 0x266   : > { %v2780_v30 = vadd.f32 %v3621_v9, %v3336_v45  ;;  %v3624_v0 = vadd.f32 %v3623_v15, %v3622_v53  ;;  %v3669_v63 = vpop.f32.mrb[47].mxu0 }
 0x267   : > { %v3670_v3 = vadd.f32 %v3669_v63, %v3668_v33 }
 0x268   : > { %v2783_v12 = vadd.f32 %v3624_v0, %v3336_v45  ;;  %v2845_v14 = vadd.f32 %v3661_v43, %v2780_v30 }
 0x26a   : > { %v3625_v16 = vpop.f32.mrb[36].mxu1  ;;  %v2848_v25 = vadd.f32 %v3664_v48, %v2783_v12 }
 0x26b   : > { %v3626_v26 = vpop.f32.mrb[37].mxu1  ;;  %v3671_v57 = vpop.f32.mrb[48].mxu0 }
 0x26c   : > { %v3627_v10 = vadd.f32 %v3626_v26, %v3625_v16  ;;  %v3628_v46 = vpop.f32.mrb[38].mxu1  ;;  %v3672_v28 = vpop.f32.mrb[49].mxu0 }
 0x26d   : > { %v3629_v27 = vpop.f32.mrb[39].mxu1  ;;  %v3673_v29 = vadd.f32 %v3672_v28, %v3671_v57  ;;  %v3674_v24 = vpop.f32.mrb[50].mxu0 }
 0x26e   : > { %v2788_v4 = vadd.f32 %v3627_v10, %v3336_v45  ;;  %v3630_v18 = vadd.f32 %v3629_v27, %v3628_v46  ;;  %v3675_v37 = vpop.f32.mrb[51].mxu0 }
 0x26f   : > { %v3676_v39 = vadd.f32 %v3675_v37, %v3674_v24 }
 0x270   : > { %v2791_v32 = vadd.f32 %v3630_v18, %v3336_v45  ;;  %v2853_v42 = vadd.f32 %v3667_v23, %v2788_v4 }
 0x272   : > { %v3631_v56 = vpop.f32.mrb[40].mxu1  ;;  %v2856_v1 = vadd.f32 %v3670_v3, %v2791_v32 }
 0x273   : > { %v3632_v52 = vpop.f32.mrb[41].mxu1  ;;  %v3677_v40 = vpop.f32.mrb[52].mxu0 }
 0x274   : > { %v3633_v41 = vadd.f32 %v3632_v52, %v3631_v56  ;;  %v3634_v55 = vpop.f32.mrb[42].mxu1  ;;  %v3678_v44 = vpop.f32.mrb[53].mxu0 }
 0x275   : > { %v3635_v2 = vpop.f32.mrb[43].mxu1  ;;  %v3679_v60 = vadd.f32 %v3678_v44, %v3677_v40  ;;  %v3680_v5 = vpop.f32.mrb[54].mxu0 }
 0x276   : > { %v2796_v34 = vadd.f32 %v3633_v41, %v3336_v45  ;;  %v3636_v20 = vadd.f32 %v3635_v2, %v3634_v55  ;;  %v3681_v61 = vpop.f32.mrb[55].mxu0 }
 0x277   : > { %v3682_v11 = vadd.f32 %v3681_v61, %v3680_v5 }
 0x278   : > { %v2799_v49 = vadd.f32 %v3636_v20, %v3336_v45  ;;  %v2861_v54 = vadd.f32 %v3673_v29, %v2796_v34 }
 0x27a   : > { %v3637_v62 = vpop.f32.mrb[44].mxu1  ;;  %v2864_v51 = vadd.f32 %v3676_v39, %v2799_v49 }
 0x27b   : > { %v3638_v7 = vpop.f32.mrb[45].mxu1 }
 0x27c   : > { %v3639_v35 = vadd.f32 %v3638_v7, %v3637_v62  ;;  %v3739_v22 = vpop.f32.mrb[56].mxu0  ;;  %v3640_v36 = vpop.f32.mrb[46].mxu1 }
 0x27d   : > { %v3740_v13 = vpop.f32.mrb[57].mxu0  ;;  %v3641_v8 = vpop.f32.mrb[47].mxu1 }
 0x27e   : > { %v2804_v19 = vadd.f32 %v3639_v35, %v3336_v45  ;;  %v3741_v17 = vadd.f32 %v3740_v13, %v3739_v22  ;;  %v3642_v59 = vadd.f32 %v3641_v8, %v3640_v36  ;;  %v3742_v58 = vpop.f32.mrb[58].mxu0 }
 0x27f   : > { %v3743_v43 = vpop.f32.mrb[59].mxu0 }
 0x280   : > { %v2807_v47 = vadd.f32 %v3642_v59, %v3336_v45  ;;  %v3744_v31 = vadd.f32 %v3743_v43, %v3742_v58  ;;  %v2869_v48 = vadd.f32 %v3679_v60, %v2804_v19 }
 0x282   : > { %v3699_v50 = vpop.f32.mrb[48].mxu1  ;;  %v2872_v6 = vadd.f32 %v3682_v11, %v2807_v47 }
 0x283   : > { %v3700_v9 = vpop.f32.mrb[49].mxu1 }
 0x284   : > { %v3701_v21 = vadd.f32 %v3700_v9, %v3699_v50  ;;  %v3745_v53 = vpop.f32.mrb[60].mxu0  ;;  %v3702_v38 = vpop.f32.mrb[50].mxu1 }
 0x285   : > { %v3746_v15 = vpop.f32.mrb[61].mxu0  ;;  %v3703_v30 = vpop.f32.mrb[51].mxu1 }
 0x286   : > { %v2910_v23 = vadd.f32 %v3701_v21, %v2845_v14  ;;  %v3747_v0 = vadd.f32 %v3746_v15, %v3745_v53  ;;  %v3704_v33 = vadd.f32 %v3703_v30, %v3702_v38  ;;  %v3748_v63 = vpop.f32.mrb[62].mxu0 }
 0x287   : > { %v3749_v12 = vpop.f32.mrb[63].mxu0 }
 0x288   : > { %v2913_v3 = vadd.f32 %v3704_v33, %v2848_v25  ;;  %v3750_v16 = vadd.f32 %v3749_v12, %v3748_v63  ;;  %v2975_v26 = vadd.f32 %v3741_v17, %v2910_v23 }
 0x28a   : > { %v3705_v10 = vpop.f32.mrb[52].mxu1  ;;  %v2978_v45 = vadd.f32 %v3744_v31, %v2913_v3 }
 0x28b   : > { %v3706_v57 = vpop.f32.mrb[53].mxu1 }
 0x28c   : > { %v3707_v46 = vadd.f32 %v3706_v57, %v3705_v10  ;;  %v3751_v28 = vpop.f32.mrb[64].mxu0  ;;  %v3708_v27 = vpop.f32.mrb[54].mxu1 }
 0x28d   : > { %v3752_v4 = vpop.f32.mrb[65].mxu0  ;;  %v3709_v29 = vpop.f32.mrb[55].mxu1 }
 0x28e   : > { %v2918_v18 = vadd.f32 %v3707_v46, %v2853_v42  ;;  %v3753_v24 = vadd.f32 %v3752_v4, %v3751_v28  ;;  %v3710_v37 = vadd.f32 %v3709_v29, %v3708_v27  ;;  %v3754_v32 = vpop.f32.mrb[66].mxu0 }
 0x28f   : > { %v3755_v14 = vpop.f32.mrb[67].mxu0 }
 0x290   : > { %v2921_v39 = vadd.f32 %v3710_v37, %v2856_v1  ;;  %v3756_v56 = vadd.f32 %v3755_v14, %v3754_v32  ;;  %v2983_v52 = vadd.f32 %v3747_v0, %v2918_v18 }
 0x292   : > { %v3711_v41 = vpop.f32.mrb[56].mxu1  ;;  %v2986_v25 = vadd.f32 %v3750_v16, %v2921_v39 }
 0x293   : > { %v3712_v40 = vpop.f32.mrb[57].mxu1 }
 0x294   : > { %v3713_v55 = vadd.f32 %v3712_v40, %v3711_v41  ;;  %v3757_v44 = vpop.f32.mrb[68].mxu0  ;;  %v3714_v2 = vpop.f32.mrb[58].mxu1 }
 0x295   : > { %v3758_v34 = vpop.f32.mrb[69].mxu0  ;;  %v3715_v60 = vpop.f32.mrb[59].mxu1 }
 0x296   : > { %v2926_v20 = vadd.f32 %v3713_v55, %v2861_v54  ;;  %v3759_v5 = vadd.f32 %v3758_v34, %v3757_v44  ;;  %v3716_v61 = vadd.f32 %v3715_v60, %v3714_v2  ;;  %v3760_v42 = vpop.f32.mrb[70].mxu0 }
 0x297   : > { %v3761_v49 = vpop.f32.mrb[71].mxu0 }
 0x298   : > { %v2929_v11 = vadd.f32 %v3716_v61, %v2864_v51  ;;  %v3762_v62 = vadd.f32 %v3761_v49, %v3760_v42  ;;  %v2991_v1 = vadd.f32 %v3753_v24, %v2926_v20 }
 0x29a   : > { %v3717_v7 = vpop.f32.mrb[60].mxu1  ;;  %v2994_v35 = vadd.f32 %v3756_v56, %v2929_v11 }
 0x29b   : > { %v3718_v22 = vpop.f32.mrb[61].mxu1 }
 0x29c   : > { %v3719_v36 = vadd.f32 %v3718_v22, %v3717_v7  ;;  %v3720_v13 = vpop.f32.mrb[62].mxu1 }
 0x29d   : > { %v3721_v8 = vpop.f32.mrb[63].mxu1 }
 0x29e   : > { %v2934_v19 = vadd.f32 %v3719_v36, %v2869_v48  ;;  %v3722_v17 = vadd.f32 %v3721_v8, %v3720_v13 }
 0x2a0   : > { %v2937_v59 = vadd.f32 %v3722_v17, %v2872_v6  ;;  %v2999_v58 = vadd.f32 %v3759_v5, %v2934_v19 }
 0x2a2   : > { %v3779_v54 = vpop.f32.mrb[64].mxu1  ;;  %v3002_v43 = vadd.f32 %v3762_v62, %v2937_v59 }
 0x2a3   : > { %v3780_v47 = vpop.f32.mrb[65].mxu1 }
 0x2a4   : > { %v3781_v51 = vadd.f32 %v3780_v47, %v3779_v54  ;;  %v3782_v31 = vpop.f32.mrb[66].mxu1 }
 0x2a5   : > { %v3783_v50 = vpop.f32.mrb[67].mxu1 }
 0x2a6   : > { %v3040_v9 = vadd.f32 %v3781_v51, %v2975_v26  ;;  %v3784_v21 = vadd.f32 %v3783_v50, %v3782_v31 }
 0x2a8   : > { %v3070_v53 = vmax.f32 %v3040_v9, 0.0  ;;  %v3043_v38 = vadd.f32 %v3784_v21, %v2978_v45 }
 0x2aa   : > { %3078 = vst [vmem:[%s5071_s10] sm:$0xff] %v3070_v53  ;;  %v3071_v48 = vmax.f32 %v3043_v38, 0.0  ;;  %v3785_v6 = vpop.f32.mrb[68].mxu1 }
 0x2ab   : > { %v3786_v15 = vpop.f32.mrb[69].mxu1 }
 0x2ac   : > { %3079 = vst [vmem:[%s5071_s10 + $0x8] sm:$0xff] %v3071_v48  ;;  %v3787_v30 = vadd.f32 %v3786_v15, %v3785_v6  ;;  %v3788_v23 = vpop.f32.mrb[70].mxu1 }
 0x2ad   : > { %v3789_v0 = vpop.f32.mrb[71].mxu1 }
 0x2ae   : > { %v3048_v33 = vadd.f32 %v3787_v30, %v2983_v52  ;;  %v3790_v63 = vadd.f32 %v3789_v0, %v3788_v23 }
 0x2b0   : > { %v3072_v12 = vmax.f32 %v3048_v33, 0.0  ;;  %v3051_v3 = vadd.f32 %v3790_v63, %v2986_v25 }
 0x2b2   : > { %3080 = vst [vmem:[%s5071_s10 + $0x10] sm:$0xff] %v3072_v12  ;;  %v3073_v16 = vmax.f32 %v3051_v3, 0.0  ;;  %v3791_v26 = vpop.f32.mrb[72].mxu1 }
 0x2b3   : > { %v3792_v10 = vpop.f32.mrb[73].mxu1 }
 0x2b4   : > { %3081 = vst [vmem:[%s5071_s10 + $0x18] sm:$0xff] %v3073_v16  ;;  %v3793_v45 = vadd.f32 %v3792_v10, %v3791_v26  ;;  %v3794_v57 = vpop.f32.mrb[74].mxu1 }
 0x2b5   : > { %v3795_v46 = vpop.f32.mrb[75].mxu1 }
 0x2b6   : > { %v3056_v28 = vadd.f32 %v3793_v45, %v2991_v1  ;;  %v3796_v27 = vadd.f32 %v3795_v46, %v3794_v57 }
 0x2b8   : > { %v3074_v4 = vmax.f32 %v3056_v28, 0.0  ;;  %v3059_v29 = vadd.f32 %v3796_v27, %v2994_v35 }
 0x2ba   : > { %3082 = vst [vmem:[%s5071_s10 + $0x20] sm:$0xff] %v3074_v4  ;;  %v3075_v18 = vmax.f32 %v3059_v29, 0.0  ;;  %v3797_v24 = vpop.f32.mrb[76].mxu1 }
 0x2bb   : > { %v3798_v37 = vpop.f32.mrb[77].mxu1 }
 0x2bc   : > { %3083 = vst [vmem:[%s5071_s10 + $0x28] sm:$0xff] %v3075_v18  ;;  %v3799_v32 = vadd.f32 %v3798_v37, %v3797_v24  ;;  %v3800_v14 = vpop.f32.mrb[78].mxu1 }
 0x2bd   : > { %v3801_v39 = vpop.f32.mrb[79].mxu1 }
 0x2be   : > { %v3064_v56 = vadd.f32 %v3799_v32, %v2999_v58  ;;  %v3802_v52 = vadd.f32 %v3801_v39, %v3800_v14 }
 0x2c0   : > { %v3076_v41 = vmax.f32 %v3064_v56, 0.0  ;;  %v3067_v25 = vadd.f32 %v3802_v52, %v3002_v43 }
 0x2c2   : > { %3084 = vst [vmem:[%s5071_s10 + $0x30] sm:$0xff] %v3076_v41  ;;  %v3077_v40 = vmax.f32 %v3067_v25, 0.0 }
 0x2c4   : > { %3085 = vst [vmem:[%s5071_s10 + $0x38] sm:$0xff] %v3077_v40 }
 0x2c5   : > { %4113 = shalt.err (!%p4110_p7)
}
 0x2c6   : > { %s4114_s26 = scalar_lea.hbm %s5087_s15, 1024  ;;  %s4118_s7 = scalar_lea.hbm %s5138_s5, 2048 }
 0x2c7   : > { %p4115_p8 = scmp.ne.s32.totalorder %s5087_s15, %s4114_s26  ;;  %p4119_p1 = scmp.lt.u32.totalorder %s5087_s15, %s5138_s5 }
 0x2c8   : > { %p4120_p0 = scmp.lt.u32.totalorder %s4118_s7, %s4114_s26  ;;  %p4122_p6 = scmp.lt.u32.totalorder %s4114_s26, %s5087_s15 }
 0x2c9   : > { %p4116_p11 = pnand %p4115_p8, %p5157_p9 }
 0x2ca   : > { %p4121_p5 = por %p4120_p0, %p4119_p1 }
 0x2cb   : > { %p4117_p13 = pneg %p4116_p11 }
 0x2cc   : > { %p4123_p10 = por %p4122_p6, %p4121_p5 }
 0x2ce   : > { %p4124_p12 = pnand %p4123_p10, %p4117_p13 }
 0x2d0   : > { %4127 = shalt.err (!%p4124_p12)
}
 0x2d1   : > { %s4173_s10 = smov 128   ;;  %s4174_s12 = smov 8  }
 0x2d2   : > { %3832 = dma.vmem_to_hbm [thread:$0]  (%p5157_p9), %s5081_s11, 1024, %s5087_s15, %s5092_s16, %s4173_s10, %s4173_s10, %s4174_s12  }
 0x2d3 PF: > { %p3844_p2 = scmp.ge.s32.totalorder %s4166_s21, 2  ;;  %s3115_s13 = sand.u32 1, %s4154_s18  }
 0x2d4   : > { %p5158_p3 = scmp.ne.s32.totalorder %s5143_s29, 0  ;;  %s3116_s14 = scalar_lea.sflag [#allocation5], %s3115_s13 }
 0x2d6   : > { %p3839_p4 = pnand %p3844_p2, %p5158_p3 }
 0x2d8   : > { %4149 = dma.done.wait (!%p3839_p4), %s3116_s14, 1024  }
 0x2d9   : > { %4151 = vsyncadd (!%p3839_p4), %s3116_s14, 4294966272  ;;  %p16_p7 = scmp.ge.s32.totalorder %s4230_s24, 4   ;;  %s5159_s18 = smov %s4158_s19 }
 0x2da   : > { %s5160_s19 = smov %s4162_s20  ;;  %s5161_s20 = smov %s4241_s27 }
 0x2db   : > { %s5162_s21 = smov %s4230_s24  ;;  %18 = sbr.rel (!%p16_p7) target bundleno = 4 (0x4), region = 81 }
 0x2e2   :  { %3121 = vsyncpa [#allocation4], 1 }
 0x2e3   :  { %3123 = vsyncpa [#allocation4 + $0x1], 1 }
 0x2e4   :  { %3124 = vsyncpa [#allocation5], 1 }
 0x2e5   :  { %3126 = vsyncpa [#allocation5 + $0x1], 1 }

</bundles_post_ra>
